<compile_context>
chip_gen: v5e
topology: v5e:2x2
jax: 0.10.0
libtpu: 0.0.40
codegen_flags: <defaults>
</compile_context>

<pallas_src>
import math
import functools

import jax
import jax.numpy as jnp
from jax import lax
from jax.experimental import pallas as pl
from jax.experimental.pallas import tpu as pltpu


# ----------------------------- shared helpers --------------------------------
def _layer_norm_modulate(x, shift, scale):
  # LayerNorm(eps=1e-6, no affine) + adaLN modulation, all f32.
  mu = jnp.mean(x, axis=-1, keepdims=True)
  xc = x - mu
  var = jnp.mean(xc * xc, axis=-1, keepdims=True)
  return (1.0 + scale) * (xc * lax.rsqrt(var + 1e-6)) + shift


def _make_rope(rows, head_dim):
  # Adjacent-pair swap (x[2m] <-> x[2m+1]) on the lane axis via XLU rotations.
  # The rotation direction is derived from a rolled iota once (convention
  # probe), and the lane/even masks are hoisted so they are built once per
  # kernel body and reused across every head.
  lane_probe = jax.lax.broadcasted_iota(jnp.int32, (8, 128), 1)
  roll_matches = pltpu.roll(lane_probe, 1, axis=1)[0:1, 1:2] == 0   # (1,1) bool
  lane = jax.lax.broadcasted_iota(jnp.int32, (rows, head_dim), 1)
  even = (lane & 1) == 0

  def rope(t, pa, pb):
    # rope(t)[i] = A[i]*t[i] + B[i]*t[i^1]; head_dim is even so pairs never
    # cross a head boundary.
    r1 = pltpu.roll(t, 1, axis=1)
    r2 = pltpu.roll(t, head_dim - 1, axis=1)
    swapped = jnp.where(even == roll_matches, r2, r1)   # = t[:, i ^ 1]
    return pa * t + pb * swapped

  return rope


def _vmem_limit_bytes():
  # Generation-dependent VMEM limit with headroom for compiler scratch:
  # ~56 MiB on v7x (64 MiB physical), ~110 MiB on v5e/v6e (128 MiB physical).
  cap = 128 * 1024 * 1024
  try:
    info = pltpu.get_tpu_info()
    cap = int(getattr(info, "vmem_capacity_bytes", cap) or cap)
  except Exception:
    pass
  return max(32 * 1024 * 1024, min(cap - 8 * 1024 * 1024, 110 * 1024 * 1024))


# --------------------- pass 1: K/V projection kernel -------------------------
def _kv_projection_kernel(x_ref, shift_ref, scale_ref, pea_ref, peb_ref,
                          w1kv_ref, b1kv_ref, kscale_ref,
                          k_out_ref, v_out_ref,
                          *, hidden, num_heads, head_dim):
  shift = shift_ref[0]                                   # (1, hidden)
  scale = scale_ref[0]
  x_rows = x_ref[0]                                      # (kv_tile, hidden) f32
  xm = _layer_norm_modulate(x_rows, shift, scale).astype(jnp.bfloat16)
  kv = jnp.dot(xm, w1kv_ref[...],
               preferred_element_type=jnp.float32) + b1kv_ref[...]

  rope = _make_rope(x_rows.shape[0], head_dim)
  pa = pea_ref[0]                                        # (kv_tile, head_dim)
  pb = peb_ref[0]
  ks = kscale_ref[...]                                   # (1, head_dim)

  # Per-head flux RMSNorm + RoPE on K, bf16 K/V to HBM in head-major layout.
  for h in range(num_heads):
    lo, hi = h * head_dim, (h + 1) * head_dim
    kh = kv[:, lo:hi]
    ms = jnp.mean(kh * kh, axis=-1, keepdims=True)
    kh = kh * lax.rsqrt(ms + 1e-6) * ks
    k_out_ref[0, h] = rope(kh, pa, pb).astype(jnp.bfloat16)
    v_out_ref[0, h] = kv[:, hidden + lo:hidden + hi].astype(jnp.bfloat16)


# --------- pass 2: streamed flash attention + GELU MLP + residual ------------
def _attn_mlp_kernel(x_ref, shift_ref, scale_ref, gate_ref, pea_ref, peb_ref,
                     k_ref, v_ref,
                     w1q_ref, b1q_ref, w1mlp_ref, b1mlp_ref,
                     w2attn_ref, w2mlp_ref, b2_ref, qscale_ref,
                     out_ref,
                     q_scr, m_scr, l_scr, acc_scr, attn_scr,
                     *, hidden, num_heads, head_dim):
  ki = pl.program_id(2)
  nk = pl.num_programs(2)

  @pl.when(ki == 0)
  def _():
    # Q projection + per-head QK-RMSNorm (sm_scale folded into q_scale) + RoPE,
    # staged bf16 into head-major VMEM scratch; online-softmax state init.
    x_rows = x_ref[0]
    shift = shift_ref[0]
    scale = scale_ref[0]
    xm = _layer_norm_modulate(x_rows, shift, scale).astype(jnp.bfloat16)
    q_full = jnp.dot(xm, w1q_ref[...],
                     preferred_element_type=jnp.float32) + b1q_ref[...]
    rope = _make_rope(x_rows.shape[0], head_dim)
    pa = pea_ref[0]
    pb = peb_ref[0]
    qs = qscale_ref[...]                                 # q_scale * head_dim**-0.5
    for h in range(num_heads):
      lo, hi = h * head_dim, (h + 1) * head_dim
      qh = q_full[:, lo:hi]
      ms = jnp.mean(qh * qh, axis=-1, keepdims=True)
      qh = rope(qh * lax.rsqrt(ms + 1e-6) * qs, pa, pb)
      q_scr[h] = qh.astype(jnp.bfloat16)
    m_scr[...] = jnp.full(m_scr.shape, -jnp.inf, dtype=m_scr.dtype)
    l_scr[...] = jnp.zeros(l_scr.shape, dtype=l_scr.dtype)
    acc_scr[...] = jnp.zeros(acc_scr.shape, dtype=acc_scr.dtype)

  # Online softmax over this kv chunk; head loop is a fori_loop over head-major
  # scratch/ref leading-axis indices (bounded live ranges, no lane slicing).
  def head_body(h, carry):
    qh = q_scr[h]                                        # (q_tile, D) bf16
    kh = k_ref[0, h]                                     # (kv_tile, D) bf16
    vh = v_ref[0, h]
    s = lax.dot_general(qh, kh, (((1,), (1,)), ((), ())),
                        preferred_element_type=jnp.float32)
    m_prev = m_scr[h]
    m_new = jnp.maximum(m_prev, jnp.max(s, axis=-1, keepdims=True))
    alpha = jnp.exp(m_prev - m_new)
    # TODO(synk): bf16 exp here on v6e/v7x (keep f32 on v5e — no bf16 EUP).
    p = jnp.exp(s - m_new)
    l_scr[h] = alpha * l_scr[h] + jnp.sum(p, axis=-1, keepdims=True)
    acc_scr[h] = alpha * acc_scr[h] + jnp.dot(
        p.astype(jnp.bfloat16), vh, preferred_element_type=jnp.float32)
    m_scr[h] = m_new
    return carry

  lax.fori_loop(0, num_heads, head_body, 0, unroll=2)

  @pl.when(ki == nk - 1)
  def _():
    # Deferred softmax normalization, one big W2 matmul for the attention slab,
    # GELU(tanh) MLP tail, gate + residual.
    for h in range(num_heads):
      lo, hi = h * head_dim, (h + 1) * head_dim
      inv_l = pl.reciprocal(l_scr[h], approx=True)
      attn_scr[:, lo:hi] = (acc_scr[h] * inv_l).astype(jnp.bfloat16)
    out = jnp.dot(attn_scr[...], w2attn_ref[...],
                  preferred_element_type=jnp.float32)

    x_rows = x_ref[0]
    shift = shift_ref[0]
    scale = scale_ref[0]
    gate = gate_ref[0]
    # Recompute the cheap modulated LayerNorm for the MLP branch instead of
    # carrying an f32 (q_tile, hidden) slab across the kv sweep.
    xm = _layer_norm_modulate(x_rows, shift, scale).astype(jnp.bfloat16)
    mlp = jnp.dot(xm, w1mlp_ref[...],
                  preferred_element_type=jnp.float32) + b1mlp_ref[...]
    c = math.sqrt(2.0 / math.pi)
    g = 0.5 * mlp * (1.0 + jnp.tanh(c * (mlp + 0.044715 * mlp * mlp * mlp)))
    out = out + jnp.dot(g.astype(jnp.bfloat16), w2mlp_ref[...],
                        preferred_element_type=jnp.float32)
    out = out + b2_ref[...]
    out_ref[0] = x_rows + gate * out


# ------------------------------- wrapper --------------------------------------
def single_stream_block(x, vec, pe, params, num_heads, q_tile=None, kv_tile=None):
  B, L, hidden = x.shape
  D = hidden // num_heads
  if q_tile is None:
    q_tile = min(L, 256)      # sweep upward on v5e/v6e if VMEM allows
  if kv_tile is None:
    kv_tile = min(L, 256)
  assert L % q_tile == 0 and L % kv_tile == 0 and hidden == num_heads * D
  f32, bf16 = jnp.float32, jnp.bfloat16

  # Modulation stays in the wrapper (degenerate M=1 matmul; keeps the
  # (hidden, 3*hidden) modulation weight out of VMEM entirely).
  silu = vec * jax.nn.sigmoid(vec)
  mod = silu @ params["mod_w"].T + params["mod_b"]
  shift, scale, gate = jnp.split(mod[:, None, :].astype(f32), 3, axis=-1)

  # RoPE 2x2 matrices flattened to per-position coefficients, (B, L, D) only —
  # NOT tiled across heads (review item: 24x less HBM/VMEM at flux).
  pe_ = pe[:, 0]                                          # (B, L, D//2, 2, 2)
  peA = jnp.stack([pe_[..., 0, 0], pe_[..., 1, 1]], axis=-1).reshape(B, L, D)
  peB = jnp.stack([pe_[..., 0, 1], pe_[..., 1, 0]], axis=-1).reshape(B, L, D)
  peA = peA.astype(f32)
  peB = peB.astype(f32)

  # Weights: transpose, split by consumer, bf16 for the MXU (f32 accumulation).
  w1_t = params["w1"].T                  # (hidden, 3*hidden + mlp_hidden)
  w1_q = w1_t[:, :hidden].astype(bf16)
  w1_kv = w1_t[:, hidden:3 * hidden].astype(bf16)
  w1_mlp = w1_t[:, 3 * hidden:].astype(bf16)
  b1 = params["b1"]
  b1_q = b1[None, :hidden].astype(f32)
  b1_kv = b1[None, hidden:3 * hidden].astype(f32)
  b1_mlp = b1[None, 3 * hidden:].astype(f32)
  w2_t = params["w2"].T                  # (hidden + mlp_hidden, hidden)
  w2_attn = w2_t[:hidden, :].astype(bf16)
  w2_mlp = w2_t[hidden:, :].astype(bf16)
  b2 = params["b2"][None, :].astype(f32)

  # Per-head-dim RMSNorm scales; softmax 1/sqrt(D) folded into q_scale.
  q_scale = (params["q_scale"] * (D ** -0.5))[None, :].astype(f32)
  k_scale = params["k_scale"][None, :].astype(f32)

  vmem_limit = _vmem_limit_bytes()

  # ---------------- pass 1: tiled linear1 -> K (normed+roped) / V -------------
  kv_kernel = functools.partial(_kv_projection_kernel, hidden=hidden,
                                num_heads=num_heads, head_dim=D)
  k_hbm, v_hbm = pl.pallas_call(
      kv_kernel,
      out_shape=(jax.ShapeDtypeStruct((B, num_heads, L, D), bf16),
                 jax.ShapeDtypeStruct((B, num_heads, L, D), bf16)),
      grid=(B, L // kv_tile),
      in_specs=[
          pl.BlockSpec((1, kv_tile, hidden), lambda b, i: (b, i, 0)),
          pl.BlockSpec((1, 1, hidden), lambda b, i: (b, 0, 0)),
          pl.BlockSpec((1, 1, hidden), lambda b, i: (b, 0, 0)),
          pl.BlockSpec((1, kv_tile, D), lambda b, i: (b, i, 0)),
          pl.BlockSpec((1, kv_tile, D), lambda b, i: (b, i, 0)),
          pl.BlockSpec(w1_kv.shape, lambda b, i: (0, 0)),
          pl.BlockSpec(b1_kv.shape, lambda b, i: (0, 0)),
          pl.BlockSpec(k_scale.shape, lambda b, i: (0, 0)),
      ],
      out_specs=(
          pl.BlockSpec((1, num_heads, kv_tile, D), lambda b, i: (b, 0, i, 0)),
          pl.BlockSpec((1, num_heads, kv_tile, D), lambda b, i: (b, 0, i, 0)),
      ),
      compiler_params=pltpu.CompilerParams(
          dimension_semantics=("parallel", "parallel"),
          vmem_limit_bytes=vmem_limit),
  )(x, shift, scale, peA, peB, w1_kv, b1_kv, k_scale)

  # -------- pass 2: streamed flash attention + MLP + gate/residual ------------
  attn_kernel = functools.partial(_attn_mlp_kernel, hidden=hidden,
                                  num_heads=num_heads, head_dim=D)
  out = pl.pallas_call(
      attn_kernel,
      out_shape=jax.ShapeDtypeStruct((B, L, hidden), x.dtype),
      grid=(B, L // q_tile, L // kv_tile),
      in_specs=[
          pl.BlockSpec((1, q_tile, hidden), lambda b, qi, ki: (b, qi, 0)),
          pl.BlockSpec((1, 1, hidden), lambda b, qi, ki: (b, 0, 0)),
          pl.BlockSpec((1, 1, hidden), lambda b, qi, ki: (b, 0, 0)),
          pl.BlockSpec((1, 1, hidden), lambda b, qi, ki: (b, 0, 0)),
          pl.BlockSpec((1, q_tile, D), lambda b, qi, ki: (b, qi, 0)),
          pl.BlockSpec((1, q_tile, D), lambda b, qi, ki: (b, qi, 0)),
          pl.BlockSpec((1, num_heads, kv_tile, D), lambda b, qi, ki: (b, 0, ki, 0)),
          pl.BlockSpec((1, num_heads, kv_tile, D), lambda b, qi, ki: (b, 0, ki, 0)),
          pl.BlockSpec(w1_q.shape, lambda b, qi, ki: (0, 0)),
          pl.BlockSpec(b1_q.shape, lambda b, qi, ki: (0, 0)),
          pl.BlockSpec(w1_mlp.shape, lambda b, qi, ki: (0, 0)),
          pl.BlockSpec(b1_mlp.shape, lambda b, qi, ki: (0, 0)),
          pl.BlockSpec(w2_attn.shape, lambda b, qi, ki: (0, 0)),
          pl.BlockSpec(w2_mlp.shape, lambda b, qi, ki: (0, 0)),
          pl.BlockSpec(b2.shape, lambda b, qi, ki: (0, 0)),
          pl.BlockSpec(q_scale.shape, lambda b, qi, ki: (0, 0)),
      ],
      out_specs=pl.BlockSpec((1, q_tile, hidden), lambda b, qi, ki: (b, qi, 0)),
      scratch_shapes=[
          pltpu.VMEM((num_heads, q_tile, D), bf16),     # q (normed+roped, scaled)
          pltpu.VMEM((num_heads, q_tile, 1), f32),      # running max  m
          pltpu.VMEM((num_heads, q_tile, 1), f32),      # running sum  l
          pltpu.VMEM((num_heads, q_tile, D), f32),      # unnormalized acc
          pltpu.VMEM((q_tile, hidden), bf16),           # normalized attn slab
      ],
      compiler_params=pltpu.CompilerParams(
          # No qi==0 side effect anymore -> q-tile axis can be parallel (v7x
          # megacore); kv axis carries the online-softmax state -> arbitrary.
          dimension_semantics=("parallel", "parallel", "arbitrary"),
          vmem_limit_bytes=vmem_limit),
  )(x, shift, scale, gate, peA, peB, k_hbm, v_hbm,
    w1_q, b1_q, w1_mlp, b1_mlp, w2_attn, w2_mlp, b2, q_scale)
  return out


# -------------------------- pure-JAX reference --------------------------------
def reference(x, vec, pe, params, num_heads):
  B, L, hidden = x.shape
  D = hidden // num_heads
  silu = vec * jax.nn.sigmoid(vec)
  mod = silu @ params["mod_w"].T + params["mod_b"]
  shift, scale, gate = jnp.split(mod[:, None, :], 3, axis=-1)
  mu = x.mean(-1, keepdims=True)
  var = ((x - mu) ** 2).mean(-1, keepdims=True)
  xn = (x - mu) / jnp.sqrt(var + 1e-6)
  x_mod = (1.0 + scale) * xn + shift
  h1 = x_mod @ params["w1"].T + params["b1"]
  qkv, mlp = h1[..., :3 * hidden], h1[..., 3 * hidden:]

  def to_heads(t):
    return t.reshape(B, L, num_heads, D).transpose(0, 2, 1, 3)

  q = to_heads(qkv[..., :hidden])
  k = to_heads(qkv[..., hidden:2 * hidden])
  v = to_heads(qkv[..., 2 * hidden:])
  q = q * jax.lax.rsqrt(jnp.mean(q * q, -1, keepdims=True) + 1e-6) * params["q_scale"]
  k = k * jax.lax.rsqrt(jnp.mean(k * k, -1, keepdims=True) + 1e-6) * params["k_scale"]

  def apply_rope(t):
    t_ = t.reshape(B, num_heads, L, D // 2, 1, 2)
    out = pe[..., 0] * t_[..., 0] + pe[..., 1] * t_[..., 1]
    return out.reshape(B, num_heads, L, D)

  q = apply_rope(q)
  k = apply_rope(k)
  s = jnp.einsum("bhqd,bhkd->bhqk", q, k) * D ** (-0.5)
  p = jax.nn.softmax(s, axis=-1)
  o = jnp.einsum("bhqk,bhkd->bhqd", p, v)
  attn = o.transpose(0, 2, 1, 3).reshape(B, L, hidden)
  c = math.sqrt(2.0 / math.pi)
  g = 0.5 * mlp * (1.0 + jnp.tanh(c * (mlp + 0.044715 * mlp ** 3)))
  out = jnp.concatenate([attn, g], axis=-1) @ params["w2"].T + params["b2"]
  return x + gate * out


# --------------------------------- main ---------------------------------------
if __name__ == "__main__":
  # Small but lane-aligned demo shapes: head_dim=128 keeps every per-head slice
  # on (8,128) tile boundaries and the output lane-dense (hidden = 2*128).
  # q_tile=kv_tile=32 so both the q-tile and kv-streaming grid axes have >1
  # step (exercises the online-softmax accumulation path).
  B, L = 2, 64
  num_heads, head_dim, mlp_ratio = 2, 128, 4.0
  hidden = num_heads * head_dim
  mlp_hidden = int(hidden * mlp_ratio)

  key = jax.random.PRNGKey(0)
  ks_ = jax.random.split(key, 11)

  def linear_init(kw, kb, out_dim, in_dim):
    bound = 1.0 / math.sqrt(in_dim)
    w = jax.random.uniform(kw, (out_dim, in_dim), jnp.float32, -bound, bound)
    b = jax.random.uniform(kb, (out_dim,), jnp.float32, -bound, bound)
    return w, b

  mod_w, mod_b = linear_init(ks_[0], ks_[1], 3 * hidden, hidden)
  w1, b1 = linear_init(ks_[2], ks_[3], 3 * hidden + mlp_hidden, hidden)
  w2, b2 = linear_init(ks_[4], ks_[5], hidden, hidden + mlp_hidden)
  # RMSNorm scales are ones in __init__; perturb slightly for test coverage.
  q_scale = 1.0 + 0.1 * jax.random.normal(ks_[6], (head_dim,), jnp.float32)
  k_scale = 1.0 + 0.1 * jax.random.normal(ks_[7], (head_dim,), jnp.float32)

  params = dict(mod_w=mod_w, mod_b=mod_b, w1=w1, b1=b1, w2=w2, b2=b2,
                q_scale=q_scale, k_scale=k_scale)

  x = jax.random.normal(ks_[8], (B, L, hidden), jnp.float32)
  vec = jax.random.normal(ks_[9], (B, hidden), jnp.float32)
  # pe: proper 2x2 rotation matrices, shape (B, 1, L, D//2, 2, 2)
  ang = jax.random.uniform(ks_[10], (B, L, head_dim // 2), jnp.float32,
                           0.0, 2.0 * math.pi)
  cos, sin = jnp.cos(ang), jnp.sin(ang)
  pe = jnp.stack([jnp.stack([cos, -sin], -1), jnp.stack([sin, cos], -1)],
                 -2)[:, None]

  out = single_stream_block(x, vec, pe, params, num_heads, q_tile=32, kv_tile=32)
  jax.block_until_ready(out)

  ref = reference(x, vec, pe, params, num_heads)
  max_err = float(jnp.max(jnp.abs(out - ref)))
  if not jnp.allclose(out, ref, rtol=2e-2, atol=2e-2):
    raise AssertionError(
        f"Pallas kernel does not match reference (max |err| = {max_err:.3e})")
  print("KERNEL_OK")
</pallas_src>

<mosaic_0001>
module attributes {stable_mosaic.version = 11 : i64} {
  func.func @_kv_projection_kernel(%arg0: i32, %arg1: i32, %arg2: memref<1x32x256xf32, #tpu.memory_space<vmem>>, %arg3: memref<1x1x256xf32, #tpu.memory_space<vmem>>, %arg4: memref<1x1x256xf32, #tpu.memory_space<vmem>>, %arg5: memref<1x32x128xf32, #tpu.memory_space<vmem>>, %arg6: memref<1x32x128xf32, #tpu.memory_space<vmem>>, %arg7: memref<256x512xbf16, #tpu.memory_space<vmem>>, %arg8: memref<1x512xf32, #tpu.memory_space<vmem>>, %arg9: memref<1x128xf32, #tpu.memory_space<vmem>>, %arg10: memref<1x2x32x128xbf16, #tpu.memory_space<vmem>>, %arg11: memref<1x2x32x128xbf16, #tpu.memory_space<vmem>>) attributes {dimension_semantics = [#tpu.dimension_semantics<parallel>, #tpu.dimension_semantics<parallel>], iteration_bounds = array<i64: 2, 2>, scalar_prefetch = 0 : i64, scratch_operands = 0 : i64, tpu.core_type = #tpu.core_type<tc>, window_params = [{transform_indices = @transform_0, window_bounds = array<i64: 1, 32, 256>}, {transform_indices = @transform_1, window_bounds = array<i64: 1, 1, 256>}, {transform_indices = @transform_2, window_bounds = array<i64: 1, 1, 256>}, {transform_indices = @transform_3, window_bounds = array<i64: 1, 32, 128>}, {transform_indices = @transform_4, window_bounds = array<i64: 1, 32, 128>}, {pipeline_mode = #tpu.pipeline_mode<synchronous>, transform_indices = @transform_5, window_bounds = array<i64: 256, 512>}, {pipeline_mode = #tpu.pipeline_mode<synchronous>, transform_indices = @transform_6, window_bounds = array<i64: 1, 512>}, {pipeline_mode = #tpu.pipeline_mode<synchronous>, transform_indices = @transform_7, window_bounds = array<i64: 1, 128>}, {transform_indices = @transform_8, window_bounds = array<i64: 1, 2, 32, 128>}, {transform_indices = @transform_9, window_bounds = array<i64: 1, 2, 32, 128>}]} {
    %c0 = arith.constant 0 : index
    %c0_0 = arith.constant 0 : index
    %c0_1 = arith.constant 0 : index
    %0 = vector.load %arg3[%c0, %c0_0, %c0_1] : memref<1x1x256xf32, #tpu.memory_space<vmem>>, vector<1x1x256xf32>
    %1 = vector.shape_cast %0 : vector<1x1x256xf32> to vector<1x256xf32>
    %c0_2 = arith.constant 0 : index
    %c0_3 = arith.constant 0 : index
    %c0_4 = arith.constant 0 : index
    %2 = vector.load %arg4[%c0_2, %c0_3, %c0_4] : memref<1x1x256xf32, #tpu.memory_space<vmem>>, vector<1x1x256xf32>
    %3 = vector.shape_cast %2 : vector<1x1x256xf32> to vector<1x256xf32>
    %c0_5 = arith.constant 0 : index
    %c0_6 = arith.constant 0 : index
    %c0_7 = arith.constant 0 : index
    %4 = vector.load %arg2[%c0_5, %c0_6, %c0_7] : memref<1x32x256xf32, #tpu.memory_space<vmem>>, vector<1x32x256xf32>
    %5 = vector.shape_cast %4 : vector<1x32x256xf32> to vector<32x256xf32>
    %cst = arith.constant dense<0.000000e+00> : vector<32xf32>
    %6 = vector.multi_reduction <add>, %5, %cst [1] : vector<32x256xf32> to vector<32xf32>
    %7 = vector.shape_cast %6 : vector<32xf32> to vector<32x1xf32>
    %cst_8 = arith.constant 2.560000e+02 : f32
    %8 = vector.broadcast %cst_8 : f32 to vector<32x1xf32>
    %9 = arith.divf %7, %8 : vector<32x1xf32>
    %10 = vector.broadcast %9 : vector<32x1xf32> to vector<32x256xf32>
    %11 = arith.subf %5, %10 : vector<32x256xf32>
    %12 = arith.mulf %11, %11 : vector<32x256xf32>
    %cst_9 = arith.constant dense<0.000000e+00> : vector<32xf32>
    %13 = vector.multi_reduction <add>, %12, %cst_9 [1] : vector<32x256xf32> to vector<32xf32>
    %14 = vector.shape_cast %13 : vector<32xf32> to vector<32x1xf32>
    %cst_10 = arith.constant 2.560000e+02 : f32
    %15 = vector.broadcast %cst_10 : f32 to vector<32x1xf32>
    %16 = arith.divf %14, %15 : vector<32x1xf32>
    %cst_11 = arith.constant 1.000000e+00 : f32
    %17 = vector.broadcast %cst_11 : f32 to vector<1x256xf32>
    %18 = arith.addf %17, %3 : vector<1x256xf32>
    %cst_12 = arith.constant 9.99999997E-7 : f32
    %19 = vector.broadcast %cst_12 : f32 to vector<32x1xf32>
    %20 = arith.addf %16, %19 : vector<32x1xf32>
    %21 = math.rsqrt %20 : vector<32x1xf32>
    %22 = vector.broadcast %21 : vector<32x1xf32> to vector<32x256xf32>
    %23 = arith.mulf %11, %22 : vector<32x256xf32>
    %24 = vector.broadcast %18 : vector<1x256xf32> to vector<32x256xf32>
    %25 = arith.mulf %24, %23 : vector<32x256xf32>
    %26 = vector.broadcast %1 : vector<1x256xf32> to vector<32x256xf32>
    %27 = arith.addf %25, %26 : vector<32x256xf32>
    %28 = arith.truncf %27 : vector<32x256xf32> to vector<32x256xbf16>
    %c0_13 = arith.constant 0 : index
    %c0_14 = arith.constant 0 : index
    %29 = vector.load %arg7[%c0_13, %c0_14] : memref<256x512xbf16, #tpu.memory_space<vmem>>, vector<256x512xbf16>
    %cst_15 = arith.constant dense<0.000000e+00> : vector<32x512xf32>
    %30 = tpu.matmul %28, %29, %cst_15 {dimension_numbers = #tpu.dot_dimension_numbers<[1], [0], [0], [1], [0, 0, 1, 1], [], []>} : vector<32x256xbf16>, vector<256x512xbf16>, vector<32x512xf32> -> vector<32x512xf32>
    %c0_16 = arith.constant 0 : index
    %c0_17 = arith.constant 0 : index
    %31 = vector.load %arg8[%c0_16, %c0_17] : memref<1x512xf32, #tpu.memory_space<vmem>>, vector<1x512xf32>
    %32 = vector.broadcast %31 : vector<1x512xf32> to vector<32x512xf32>
    %33 = arith.addf %30, %32 : vector<32x512xf32>
    %34 = tpu.iota {dimensions = array<i32: 1>} : vector<8x128xi32>
    %c1_i32 = arith.constant 1 : i32
    %35 = tpu.dynamic_rotate %34 by %c1_i32 dim 1 : vector<8x128xi32>, i32 -> vector<8x128xi32>
    %36 = vector.extract_strided_slice %35 {offsets = [0, 1], sizes = [1, 1], strides = [1, 1]} : vector<8x128xi32> to vector<1x1xi32>
    %c0_i32 = arith.constant 0 : i32
    %37 = vector.broadcast %c0_i32 : i32 to vector<1x1xi32>
    %38 = arith.cmpi eq, %36, %37 : vector<1x1xi32>
    %39 = tpu.iota {dimensions = array<i32: 1>} : vector<32x128xi32>
    %c1_i32_18 = arith.constant 1 : i32
    %40 = vector.broadcast %c1_i32_18 : i32 to vector<32x128xi32>
    %41 = arith.andi %39, %40 : vector<32x128xi32>
    %c0_i32_19 = arith.constant 0 : i32
    %42 = vector.broadcast %c0_i32_19 : i32 to vector<32x128xi32>
    %43 = arith.cmpi eq, %41, %42 : vector<32x128xi32>
    %c0_20 = arith.constant 0 : index
    %c0_21 = arith.constant 0 : index
    %c0_22 = arith.constant 0 : index
    %44 = vector.load %arg5[%c0_20, %c0_21, %c0_22] : memref<1x32x128xf32, #tpu.memory_space<vmem>>, vector<1x32x128xf32>
    %45 = vector.shape_cast %44 : vector<1x32x128xf32> to vector<32x128xf32>
    %c0_23 = arith.constant 0 : index
    %c0_24 = arith.constant 0 : index
    %c0_25 = arith.constant 0 : index
    %46 = vector.load %arg6[%c0_23, %c0_24, %c0_25] : memref<1x32x128xf32, #tpu.memory_space<vmem>>, vector<1x32x128xf32>
    %47 = vector.shape_cast %46 : vector<1x32x128xf32> to vector<32x128xf32>
    %c0_26 = arith.constant 0 : index
    %c0_27 = arith.constant 0 : index
    %48 = vector.load %arg9[%c0_26, %c0_27] : memref<1x128xf32, #tpu.memory_space<vmem>>, vector<1x128xf32>
    %49 = vector.extract_strided_slice %33 {offsets = [0, 0], sizes = [32, 128], strides = [1, 1]} : vector<32x512xf32> to vector<32x128xf32>
    %50 = arith.mulf %49, %49 : vector<32x128xf32>
    %cst_28 = arith.constant dense<0.000000e+00> : vector<32xf32>
    %51 = vector.multi_reduction <add>, %50, %cst_28 [1] : vector<32x128xf32> to vector<32xf32>
    %52 = vector.shape_cast %51 : vector<32xf32> to vector<32x1xf32>
    %cst_29 = arith.constant 1.280000e+02 : f32
    %53 = vector.broadcast %cst_29 : f32 to vector<32x1xf32>
    %54 = arith.divf %52, %53 : vector<32x1xf32>
    %cst_30 = arith.constant 9.99999997E-7 : f32
    %55 = vector.broadcast %cst_30 : f32 to vector<32x1xf32>
    %56 = arith.addf %54, %55 : vector<32x1xf32>
    %57 = math.rsqrt %56 : vector<32x1xf32>
    %58 = vector.broadcast %57 : vector<32x1xf32> to vector<32x128xf32>
    %59 = arith.mulf %49, %58 : vector<32x128xf32>
    %60 = vector.broadcast %48 : vector<1x128xf32> to vector<32x128xf32>
    %61 = arith.mulf %59, %60 : vector<32x128xf32>
    %c1_i32_31 = arith.constant 1 : i32
    %62 = tpu.dynamic_rotate %61 by %c1_i32_31 dim 1 : vector<32x128xf32>, i32 -> vector<32x128xf32>
    %c127_i32 = arith.constant 127 : i32
    %63 = tpu.dynamic_rotate %61 by %c127_i32 dim 1 : vector<32x128xf32>, i32 -> vector<32x128xf32>
    %64 = vector.broadcast %38 : vector<1x1xi1> to vector<32x128xi1>
    %65 = vector.broadcast %64 : vector<32x128xi1> to vector<32x128xi1>
    %66 = arith.xori %43, %65 : vector<32x128xi1>
    %cst_32 = arith.constant dense<true> : vector<32x128xi1>
    %67 = arith.xori %66, %cst_32 : vector<32x128xi1>
    %68 = arith.select %67, %63, %62 : vector<32x128xi1>, vector<32x128xf32>
    %69 = arith.mulf %45, %61 : vector<32x128xf32>
    %70 = arith.mulf %47, %68 : vector<32x128xf32>
    %71 = arith.addf %69, %70 : vector<32x128xf32>
    %72 = arith.truncf %71 : vector<32x128xf32> to vector<32x128xbf16>
    %c0_33 = arith.constant 0 : index
    %c0_34 = arith.constant 0 : index
    %c0_35 = arith.constant 0 : index
    %c0_36 = arith.constant 0 : index
    %73 = vector.load %arg10[%c0_33, %c0_34, %c0_35, %c0_36] : memref<1x2x32x128xbf16, #tpu.memory_space<vmem>>, vector<1x1x32x128xbf16>
    %74 = vector.shape_cast %73 : vector<1x1x32x128xbf16> to vector<32x128xbf16>
    %75 = vector.shape_cast %72 : vector<32x128xbf16> to vector<1x1x32x128xbf16>
    tpu.vector_store %arg10[%c0_33, %c0_34, %c0_35, %c0_36], %75 {strides = array<i32>} : memref<1x2x32x128xbf16, #tpu.memory_space<vmem>>, vector<1x1x32x128xbf16>,
    %76 = vector.extract_strided_slice %33 {offsets = [0, 256], sizes = [32, 128], strides = [1, 1]} : vector<32x512xf32> to vector<32x128xf32>
    %77 = arith.truncf %76 : vector<32x128xf32> to vector<32x128xbf16>
    %c0_37 = arith.constant 0 : index
    %c0_38 = arith.constant 0 : index
    %c0_39 = arith.constant 0 : index
    %c0_40 = arith.constant 0 : index
    %78 = vector.load %arg11[%c0_37, %c0_38, %c0_39, %c0_40] : memref<1x2x32x128xbf16, #tpu.memory_space<vmem>>, vector<1x1x32x128xbf16>
    %79 = vector.shape_cast %78 : vector<1x1x32x128xbf16> to vector<32x128xbf16>
    %80 = vector.shape_cast %77 : vector<32x128xbf16> to vector<1x1x32x128xbf16>
    tpu.vector_store %arg11[%c0_37, %c0_38, %c0_39, %c0_40], %80 {strides = array<i32>} : memref<1x2x32x128xbf16, #tpu.memory_space<vmem>>, vector<1x1x32x128xbf16>,
    %81 = vector.extract_strided_slice %33 {offsets = [0, 128], sizes = [32, 128], strides = [1, 1]} : vector<32x512xf32> to vector<32x128xf32>
    %82 = arith.mulf %81, %81 : vector<32x128xf32>
    %cst_41 = arith.constant dense<0.000000e+00> : vector<32xf32>
    %83 = vector.multi_reduction <add>, %82, %cst_41 [1] : vector<32x128xf32> to vector<32xf32>
    %84 = vector.shape_cast %83 : vector<32xf32> to vector<32x1xf32>
    %cst_42 = arith.constant 1.280000e+02 : f32
    %85 = vector.broadcast %cst_42 : f32 to vector<32x1xf32>
    %86 = arith.divf %84, %85 : vector<32x1xf32>
    %cst_43 = arith.constant 9.99999997E-7 : f32
    %87 = vector.broadcast %cst_43 : f32 to vector<32x1xf32>
    %88 = arith.addf %86, %87 : vector<32x1xf32>
    %89 = math.rsqrt %88 : vector<32x1xf32>
    %90 = vector.broadcast %89 : vector<32x1xf32> to vector<32x128xf32>
    %91 = arith.mulf %81, %90 : vector<32x128xf32>
    %92 = vector.broadcast %48 : vector<1x128xf32> to vector<32x128xf32>
    %93 = arith.mulf %91, %92 : vector<32x128xf32>
    %c1_i32_44 = arith.constant 1 : i32
    %94 = tpu.dynamic_rotate %93 by %c1_i32_44 dim 1 : vector<32x128xf32>, i32 -> vector<32x128xf32>
    %c127_i32_45 = arith.constant 127 : i32
    %95 = tpu.dynamic_rotate %93 by %c127_i32_45 dim 1 : vector<32x128xf32>, i32 -> vector<32x128xf32>
    %96 = vector.broadcast %38 : vector<1x1xi1> to vector<32x128xi1>
    %97 = vector.broadcast %96 : vector<32x128xi1> to vector<32x128xi1>
    %98 = arith.xori %43, %97 : vector<32x128xi1>
    %cst_46 = arith.constant dense<true> : vector<32x128xi1>
    %99 = arith.xori %98, %cst_46 : vector<32x128xi1>
    %100 = arith.select %99, %95, %94 : vector<32x128xi1>, vector<32x128xf32>
    %101 = arith.mulf %45, %93 : vector<32x128xf32>
    %102 = arith.mulf %47, %100 : vector<32x128xf32>
    %103 = arith.addf %101, %102 : vector<32x128xf32>
    %104 = arith.truncf %103 : vector<32x128xf32> to vector<32x128xbf16>
    %c0_47 = arith.constant 0 : index
    %c1 = arith.constant 1 : index
    %c0_48 = arith.constant 0 : index
    %c0_49 = arith.constant 0 : index
    %105 = vector.load %arg10[%c0_47, %c1, %c0_48, %c0_49] : memref<1x2x32x128xbf16, #tpu.memory_space<vmem>>, vector<1x1x32x128xbf16>
    %106 = vector.shape_cast %105 : vector<1x1x32x128xbf16> to vector<32x128xbf16>
    %107 = vector.shape_cast %104 : vector<32x128xbf16> to vector<1x1x32x128xbf16>
    tpu.vector_store %arg10[%c0_47, %c1, %c0_48, %c0_49], %107 {strides = array<i32>} : memref<1x2x32x128xbf16, #tpu.memory_space<vmem>>, vector<1x1x32x128xbf16>,
    %108 = vector.extract_strided_slice %33 {offsets = [0, 384], sizes = [32, 128], strides = [1, 1]} : vector<32x512xf32> to vector<32x128xf32>
    %109 = arith.truncf %108 : vector<32x128xf32> to vector<32x128xbf16>
    %c0_50 = arith.constant 0 : index
    %c1_51 = arith.constant 1 : index
    %c0_52 = arith.constant 0 : index
    %c0_53 = arith.constant 0 : index
    %110 = vector.load %arg11[%c0_50, %c1_51, %c0_52, %c0_53] : memref<1x2x32x128xbf16, #tpu.memory_space<vmem>>, vector<1x1x32x128xbf16>
    %111 = vector.shape_cast %110 : vector<1x1x32x128xbf16> to vector<32x128xbf16>
    %112 = vector.shape_cast %109 : vector<32x128xbf16> to vector<1x1x32x128xbf16>
    tpu.vector_store %arg11[%c0_50, %c1_51, %c0_52, %c0_53], %112 {strides = array<i32>} : memref<1x2x32x128xbf16, #tpu.memory_space<vmem>>, vector<1x1x32x128xbf16>,
    return
  }
  func.func @transform_0(%arg0: i32, %arg1: i32) -> (i32, i32, i32) {
    %c0_i32 = arith.constant 0 : i32
    %c0_i32_0 = arith.constant 0 : i32
    return %arg0, %arg1, %c0_i32 : i32, i32, i32
  }
  func.func @transform_1(%arg0: i32, %arg1: i32) -> (i32, i32, i32) {
    %c0_i32 = arith.constant 0 : i32
    %c0_i32_0 = arith.constant 0 : i32
    %c0_i32_1 = arith.constant 0 : i32
    return %arg0, %c0_i32, %c0_i32_0 : i32, i32, i32
  }
  func.func @transform_2(%arg0: i32, %arg1: i32) -> (i32, i32, i32) {
    %c0_i32 = arith.constant 0 : i32
    %c0_i32_0 = arith.constant 0 : i32
    %c0_i32_1 = arith.constant 0 : i32
    return %arg0, %c0_i32, %c0_i32_0 : i32, i32, i32
  }
  func.func @transform_3(%arg0: i32, %arg1: i32) -> (i32, i32, i32) {
    %c0_i32 = arith.constant 0 : i32
    %c0_i32_0 = arith.constant 0 : i32
    return %arg0, %arg1, %c0_i32 : i32, i32, i32
  }
  func.func @transform_4(%arg0: i32, %arg1: i32) -> (i32, i32, i32) {
    %c0_i32 = arith.constant 0 : i32
    %c0_i32_0 = arith.constant 0 : i32
    return %arg0, %arg1, %c0_i32 : i32, i32, i32
  }
  func.func @transform_5(%arg0: i32, %arg1: i32) -> (i32, i32) {
    %c0_i32 = arith.constant 0 : i32
    %c0_i32_0 = arith.constant 0 : i32
    %c0_i32_1 = arith.constant 0 : i32
    return %c0_i32, %c0_i32_0 : i32, i32
  }
  func.func @transform_6(%arg0: i32, %arg1: i32) -> (i32, i32) {
    %c0_i32 = arith.constant 0 : i32
    %c0_i32_0 = arith.constant 0 : i32
    %c0_i32_1 = arith.constant 0 : i32
    return %c0_i32, %c0_i32_0 : i32, i32
  }
  func.func @transform_7(%arg0: i32, %arg1: i32) -> (i32, i32) {
    %c0_i32 = arith.constant 0 : i32
    %c0_i32_0 = arith.constant 0 : i32
    %c0_i32_1 = arith.constant 0 : i32
    return %c0_i32, %c0_i32_0 : i32, i32
  }
  func.func @transform_8(%arg0: i32, %arg1: i32) -> (i32, i32, i32, i32) {
    %c0_i32 = arith.constant 0 : i32
    %c0_i32_0 = arith.constant 0 : i32
    %c0_i32_1 = arith.constant 0 : i32
    return %arg0, %c0_i32, %arg1, %c0_i32_0 : i32, i32, i32, i32
  }
  func.func @transform_9(%arg0: i32, %arg1: i32) -> (i32, i32, i32, i32) {
    %c0_i32 = arith.constant 0 : i32
    %c0_i32_0 = arith.constant 0 : i32
    %c0_i32_1 = arith.constant 0 : i32
    return %arg0, %c0_i32, %arg1, %c0_i32_0 : i32, i32, i32, i32
  }
}

</mosaic_0001>

<bundles_post_ra>
// kernel: tpu_custom_call.1
= control target key start
LH: loop header
LB: loop body
LE: loop exit
PB: predicated region body
PF: predicated region fallthrough
CT: control target
= control target key end

     0   :  { %s3512_s0 = inlined_call_operand.hbm [shape: f32[2,64,256], index: 0, kind: input, shape index: {}]   ;;  %s3513_s1 = inlined_call_operand.hbm [shape: f32[2,1,256], index: 1, kind: input, shape index: {}]   ;;  %s3514_s2 = inlined_call_operand.hbm [shape: f32[2,1,256], index: 2, kind: input, shape index: {}]   ;;  %s3515_s3 = inlined_call_operand.hbm [shape: f32[2,64,128], index: 3, kind: input, shape index: {}]   ;;  %s3516_s4 = inlined_call_operand.hbm [shape: f32[2,64,128], index: 4, kind: input, shape index: {}]   ;;  %s3517_s5 = inlined_call_operand.hbm [shape: bf16[256,512], index: 5, kind: input, shape index: {}]   ;;  %s3518_s6 = inlined_call_operand.vmem [shape: f32[1,512], index: 6, kind: input, shape index: {}]   ;;  %s3519_s7 = inlined_call_operand.vmem [shape: f32[1,128], index: 7, kind: input, shape index: {}]   ;;  %s3520_s8 = inlined_call_operand.hbm [shape: bf16[2,2,64,128], index: 8, kind: output, shape index: {0}]   ;;  %s3521_s9 = inlined_call_operand.hbm [shape: bf16[2,2,64,128], index: 9, kind: output, shape index: {1}]  }
   0x1   :  { %3540 = sst [smem:[#allocation42_spill]] %s3513_s1 }
   0x2   :  { %3541 = sst [smem:[#allocation43_spill]] %s3514_s2 }
   0x3   :  { %3542 = sst [smem:[#allocation44_spill]] %s3515_s3 }
   0x4   :  { %3543 = sst [smem:[#allocation45_spill]] %s3516_s4 }
   0x5   :  { %3544 = sst [smem:[#allocation46_spill]] %s3517_s5 }
   0x6   :  { %3545 = sst [smem:[#allocation47_spill]] %s3518_s6 }
   0x7   :  { %3546 = sst [smem:[#allocation48_spill]] %s3519_s7 }
   0x8   :  { %3547 = sst [smem:[#allocation49_spill]] %s3520_s8 }
   0x9   :  { %3548 = sst [smem:[#allocation50_spill]] %s3521_s9 }
   0xa   :  { %15 = vsyncpa [#allocation3], 0 }
   0xb   :  { %17 = vsyncpa [#allocation3 + $0x1], 0 }
   0xc   :  { %18 = vsyncpa [#allocation6], 0 }
   0xd   :  { %20 = vsyncpa [#allocation6 + $0x1], 0 }
   0xe   :  { %21 = vsyncpa [#allocation9], 0 }
   0xf   :  { %23 = vsyncpa [#allocation9 + $0x1], 0 }
  0x10   :  { %24 = vsyncpa [#allocation12], 0 }
  0x11   :  { %25 = vsyncpa [#allocation4], 0 }
  0x12   :  { %27 = vsyncpa [#allocation4 + $0x1], 0 }
  0x13   :  { %28 = vsyncpa [#allocation15], 0 }
  0x14   :  { %30 = vsyncpa [#allocation15 + $0x1], 0  ;;  %s2833_s30 = smov 0   ;;  %s2835_s10 = smov 0  }
  0x15   :  { %s2837_s11 = smov 0   ;;  %s2839_s12 = smov 0  }
  0x16   :  { %s2841_s13 = smov 0   ;;  %s2843_s14 = smov 0  }
  0x17   :  { %s2845_s15 = smov 0   ;;  %s2847_s16 = smov 0  }
  0x18   :  { %s2849_s17 = smov 0   ;;  %s2851_s18 = smov 0  }
  0x19   :  { %s2853_s19 = smov 0  }
  0x1a LB: > { %3549 = sst [smem:[#allocation26_spill]] %s2722_s10  ;;  %s2889_s20 = sadd.s32 4294967295, %s2758_s19   ;;  %s2758_s19 = sphi %s2853_s19, %s36_s19   ;;  %s2754_s18 = sphi %s2851_s18, %s3606_s18   ;;  %s2750_s17 = sphi %s2849_s17, %s3605_s17   ;;  %s2746_s16 = sphi %s2847_s16, %s3604_s16   ;;  %s2742_s15 = sphi %s2845_s15, %s3603_s15   ;;  %s2738_s14 = sphi %s2843_s14, %s3602_s14   ;;  %s2734_s13 = sphi %s2841_s13, %s3608_s13   ;;  %s2730_s12 = sphi %s2839_s12, %s3607_s12   ;;  %s2726_s11 = sphi %s2837_s11, %s3600_s11   ;;  %s2722_s10 = sphi %s2835_s10, %s3599_s10   ;;  %s2718_s30 = sphi %s2833_s30, %s3598_s30  }
  0x1b   : > { %3550 = sst [smem:[#allocation27_spill]] %s2726_s11  ;;  %s1850_s21 = sadd.s32 4294967294, %s2758_s19  }
  0x1c   : > { %3551 = sst [smem:[#allocation28_spill]] %s2730_s12  ;;  %s45_s22 = sadd.s32 1, %s2750_s17 }
  0x1d   : > { %3552 = sst [smem:[#allocation29_spill]] %s2738_s14  ;;  %s48_s23 = sadd.s32 1, %s2754_s18 }
  0x1e   : > { %3553 = sst [smem:[#allocation30_spill]] %s2742_s15  ;;  %p46_p0 = scmp.ge.s32.totalorder %s45_s22, 2 }
  0x1f   : > { %3554 = sst [smem:[#allocation31_spill]] %s2746_s16  ;;  %s57_s24 = sadd.s32 1, %s2738_s14 }
  0x20   : > { %3555 = sst [smem:[#allocation32_spill]] %s2750_s17  ;;  %p64_p1 = scmp.ne.s32.totalorder %s2738_s14, %s2734_s13 }
  0x21   : > { %3556 = sst [smem:[#allocation33_spill]] %s2754_s18  ;;  %p65_p2 = scmp.eq.s32.totalorder %s2758_s19, 0 }
  0x22   : > { %3557 = sst [smem:[#allocation34_spill]] %s2758_s19  ;;  %s3610_s22 = smov (%p46_p0, %s45_s22), 0 }
  0x23   : > { %3558 = sst [smem:[#allocation35_spill]] %s3610_s22  ;;  %s3612_s23 = smov (!%p46_p0, %s48_s23), %s2754_s18 }
  0x24   : > { %s53_s25 = ssub.s32 %s2750_s17, %s3610_s22  ;;  %p2908_p3 = por %p65_p2, %p64_p1 }
  0x25   : > { %p50_p4 = scmp.ge.s32.totalorder %s3612_s23, 2  ;;  %p3523_p5 = scmp.ne.s32.totalorder %s2734_s13, %s2730_s12 }
  0x26   : > { %p71_p6 = scmp.eq.s32.totalorder %s2889_s20, 0  ;;  %s83_s27 = sadd.s32 1, %s2726_s11 }
  0x27   : > { %s3614_s23 = smov (%p50_p4, %s3612_s23), 0  ;;  %p90_p8 = scmp.ne.s32.totalorder %s2726_s11, %s2722_s10 }
  0x28   : > { %3560 = sst [smem:[#allocation36_spill]] %s3614_s23  ;;  %p2923_p7 = por %p71_p6, %p3523_p5 }
  0x29   : > { %s52_s29 = ssub.s32 %s2754_s18, %s3614_s23  ;;  %p96_p9 = scmp.ne.s32.totalorder %s2722_s10, %s2718_s30 }
  0x2a   : > { %s54_s22 = sor.u32 %s53_s25, %s52_s29  ;;  %p81_p10 = scmp.eq.s32.totalorder %s52_s29, 0 }
  0x2b   : > { %p55_p11 = scmp.eq.s32.totalorder %s54_s22, 0  ;;  %p2935_p12 = por %p90_p8, %p65_p2 }
  0x2c   : > { %s2940_s8 = scalar_select %p81_p10, %s2726_s11, %s83_s27  }
  0x2d   : > { %s2943_s16 = scalar_select %p55_p11, %s2738_s14, %s57_s24  }
  0x2e   : > { %3563 = sst [smem:[#allocation37_spill]] %s2940_s8  ;;  %p2947_p13 = por %p96_p9, %p71_p6 }
  0x2f   : > { %3564 = sst [smem:[#allocation38_spill]] %s2943_s16  ;;  %p267_p0 = scmp.eq.s32.totalorder %s2889_s20, 3 }
  0x30   : > { %s3565_s15 = scalar_select %p2947_p13, 1, 0 }
  0x31   : > { %p273_p4 = scmp.eq.s32.totalorder %s1850_s21, 3  ;;  %p2955_p5 = por %p267_p0, %p64_p1 }
  0x32   : > { %3566 = sst [smem:[#allocation39_spill]] %s3565_s15  ;;  %p3569_p2 = scmp.ne.s32.totalorder %s2734_s13, %s2730_s12 }
  0x33   : > { %s3567_s30 = scalar_select %p2955_p5, 1, 0 }
  0x34   : > { %p2962_p8 = por %p273_p4, %p3569_p2  ;;  %p2325_p10 = scmp.lt.s32.totalorder %s2758_s19, 4 }
  0x35   : > { %3568 = sst [smem:[#allocation40_spill]] %s3567_s30  ;;  %s366_s24 = sand.u32 1, %s2758_s19  }
  0x36   : > { %s3570_s22 = scalar_select %p2962_p8, 1, 0 }
  0x37   : > { %s368_s25 = sand.u32 1, %s2726_s11   ;;  %p2971_p9 = pnand %p2325_p10, %p2908_p3 }
  0x38   : > { %3571 = sst [smem:[#allocation41_spill]] %s3570_s22  ;;  %s2975_s21 = sshll.u32 %s368_s25, 1 }
  0x39   : > { %s1860_s29 = sshll.u32 %s2754_s18, 1  ;;  %s3573_s1 = sld [smem:[#allocation42_spill]] }
  0x3a   : > { %s370_s22 = scalar_lea.vmem [#allocation5], %s2975_s21  ;;  %p2984_p1 = pnand %p2325_p10, %p2935_p12 }
  0x3b   : > { %s378_s12 = sshll.u32 %s370_s22, 4  ;;  %s3575_s2 = sld [smem:[#allocation43_spill]]  ;;  %s379_s12 = int_to_ptr.vmem [resolvable:$true] %s378_s12 }
  0x3c   : > { %s2993_s6 = scalar_lea.sflag [#allocation6], %s366_s24  ;;  %s1864_s9 = sshll.u32 %s2750_s17, 2 }
  0x3d   : > { %s1865_s23 = sshll.u32 %s2754_s18, 3  ;;  %s3576_s3 = sld [smem:[#allocation44_spill]] }
  0x3e   : > { %s413_s22 = sadd.s32 %s1865_s23, %s1864_s9  ;;  %s3577_s4 = sld [smem:[#allocation45_spill]] }
  0x3f   : > { %s374_s8 = scalar_lea.hbm %s3573_s1, %s1860_s29  ;;  %s1866_s1 = sshll.u32 %s413_s22, 3 }
  0x40   : > { %s376_s30 = sshll.u32 %s374_s8, 4  ;;  %s2999_s8 = sand.u32 1, %s2738_s14   ;;  %s377_s30 = int_to_ptr.hbm [resolvable:$true] %s376_s30 }
  0x41   : > { %s2991_s25 = scalar_lea.hbm %s3575_s2, %s1860_s29  ;;  %s1863_s16 = sshll.u32 %s2999_s8, 5 }
  0x42   : > { %2307 = dma.hbm_to_vmem [thread:$0]  (!%p2984_p1), %s377_s30, 32, %s379_s12, %s2993_s6  }
  0x43   : > { %s408_s15 = scalar_lea.vmem [#allocation8], %s1863_s16  ;;  %s415_s2 = scalar_lea.hbm %s3576_s3, %s1866_s1 }
  0x44   : > { %s418_s7 = sshll.u32 %s408_s15, 4  ;;  %s416_s10 = sshll.u32 %s415_s2, 4  ;;  %s419_s7 = int_to_ptr.vmem [resolvable:$true] %s418_s7  ;;  %s417_s10 = int_to_ptr.hbm [resolvable:$true] %s416_s10 }
  0x45   : > { %s3007_s12 = scalar_lea.sflag [#allocation9], %s366_s24  ;;  %s3534_s30 = smov 128  }
  0x46   : > { %s3535_s14 = smov 8   ;;  %s439_s23 = scalar_lea.hbm %s3577_s4, %s1866_s1 }
  0x47   : > { %2313 = dma.hbm_to_vmem [thread:$0]  (!%p2971_p9), %s417_s10, 512, %s419_s7, %s3007_s12, %s3534_s30, %s3534_s30, %s3535_s14  }
  0x48   : > { %s440_s22 = sshll.u32 %s439_s23, 4  ;;  %s432_s2 = scalar_lea.vmem [#allocation10], %s1863_s16  ;;  %s3018_s22 = int_to_ptr.hbm [resolvable:$true] %s440_s22 }
  0x49   : > { %s442_s24 = sshll.u32 %s432_s2, 4  ;;  %p1851_p3 = scmp.ge.s32.totalorder %s2758_s19, 1  ;;  %s3020_s24 = int_to_ptr.vmem [resolvable:$true] %s442_s24 }
  0x4a   : > { %p308_p11 = scmp.lt.s32.totalorder %s2758_s19, 5  ;;  %s3578_s5 = sld [smem:[#allocation46_spill]] }
  0x4b   : > { %s2762_s1 = smov [#allocation11]   ;;  %s1854_s9 = sshll.u32 %s2999_s8, 6 }
  0x4c   : > { %p3027_p12 = pnand %p1851_p3, %p308_p11  ;;  %s321_s16 = sshll.u32 %s2762_s1, 4  ;;  %s322_s16 = int_to_ptr.vmem [resolvable:$true] %s321_s16 }
  0x4d   : > { %s2154_s15 = sshll.u32 %s2750_s17, 3  ;;  %s1857_s23 = sshll.u32 %s2754_s18, 4 }
  0x4e   : > { %p2297_p0 = pneg %p3027_p12  ;;  %s2763_s2 = smov 256  }
  0x4f   : > { %s2764_s11 = smov 16   ;;  %s351_s29 = sadd.s32 %s2154_s15, %s1857_s23 }
  0x50   : > { %s319_s10 = sshll.u32 %s3578_s5, 4  ;;  %p2298_p4 = pnand %p2297_p0, %p71_p6  ;;  %s320_s10 = int_to_ptr.hbm [resolvable:$true] %s319_s10 }
  0x51   : > { %s345_s1 = scalar_lea.vmem [#allocation2], %s1854_s9  ;;  %s1858_s14 = sshll.u32 %s351_s29, 3 }
  0x52   : > { %2300 = dma.hbm_to_vmem [thread:$0]  (!%p2298_p4), %s320_s10, 8192, %s322_s16, [#allocation12], %s2763_s2, %s2763_s2, %s2764_s11  }
  0x53   : > { %s356_s30 = sshll.u32 %s345_s1, 4  ;;  %s353_s5 = scalar_lea.hbm %s3512_s0, %s1858_s14  ;;  %s357_s30 = int_to_ptr.vmem [resolvable:$true] %s356_s30 }
  0x54   : > { %s395_s18 = sshll.u32 %s2991_s25, 4  ;;  %s354_s17 = sshll.u32 %s353_s5, 4  ;;  %s396_s18 = int_to_ptr.hbm [resolvable:$true] %s395_s18  ;;  %s355_s17 = int_to_ptr.hbm [resolvable:$true] %s354_s17 }
  0x55   : > { %s389_s10 = scalar_lea.vmem [#allocation7], %s2975_s21  ;;  %s342_s19 = scalar_lea.sflag [#allocation3], %s2999_s8 }
  0x56   : > { %s397_s16 = sshll.u32 %s389_s10, 4  ;;  %s3580_s9 = smov 8   ;;  %s398_s16 = int_to_ptr.vmem [resolvable:$true] %s397_s16 }
  0x57   : > { %2304 = dma.hbm_to_vmem [thread:$0]  (!%p2971_p9), %s355_s17, 1024, %s357_s30, %s342_s19, %s2763_s2, %s2763_s2, %s2764_s11  }
  0x58   : > { %2310 = dma.hbm_to_vmem [thread:$0]  (!%p2984_p1), %s396_s18, 32, %s398_s16, %s2993_s6  }
  0x59   : > { %s3581_s15 = smov 128   ;;  %454 = sbr.rel (%p3027_p12) target bundleno = 903 (0x387), region = 52 }
  0x5a   : > { %2316 = dma.hbm_to_vmem [thread:$0]  (!%p2971_p9), %s3018_s22, 512, %s3020_s24, %s3007_s12, %s3581_s15, %s3581_s15, %s3580_s9  }
  0x5b   : > { %s3060_s3 = sand.u32 (!%p3027_p12), 1, %s2734_s13  }
  0x5c   : > { %s1872_s4 = sshll.u32 (!%p3027_p12), %s3060_s3, 6  ;;  %s457_s5 = scalar_lea.sflag (!%p3027_p12), [#allocation3], %s3060_s3 }
  0x5d   : > { %s460_s14 = scalar_lea.vmem (!%p3027_p12), [#allocation2], %s1872_s4 }
  0x5e   : > { %2693 = dma.done.wait (%p2923_p7), %s457_s5, 1024  }
  0x5f   : > { %2695 = vsyncadd (%p2923_p7), %s457_s5, 4294966272  ;;  %s3582_s6 = sld [smem:[#allocation26_spill]]  ;;  %s466_s18 = sand.u32 1, %s2889_s20  }
  0x60   : > { %s467_s21 = scalar_lea.sflag [#allocation6], %s466_s18 }
  0x65   : > { %s468_s19 = sand.u32 1, %s3582_s6  }
  0x66   : > { %s3070_s27 = sshll.u32 %s468_s19, 1 }
  0x67   : > { %s470_s26 = scalar_lea.vmem [#allocation5], %s3070_s27 }
  0x68   : > { %2697 = dma.done.wait (%p2947_p13), %s467_s21, 64  }
  0x69   : > { %2699 = vsyncadd (%p2947_p13), %s467_s21, 4294967232  ;;  %s3078_s25 = sshll.u32 %s3060_s3, 5  ;;  %s480_s8 = scalar_lea.vmem [#allocation7], %s3070_s27 }
  0x6a   : > { %s487_s12 = scalar_lea.sflag [#allocation9], %s466_s18  ;;  %s3082_s30 = scalar_lea.vmem [#allocation8], %s3078_s25 }
  0x6b   : > { %2701 = dma.done.wait (%p2923_p7), %s487_s12, 1024  }
  0x6c   : > { %2703 = vsyncadd (%p2923_p7), %s487_s12, 4294966272  ;;  %s3089_s22 = scalar_lea.vmem [#allocation10], %s3078_s25 }
  0x6d   : > { %2705 = dma.done.wait (%p71_p6), [#allocation12], 8192  }
  0x6e   : > { %2707 = vsyncadd (%p71_p6), [#allocation12], 4294959104  ;;  %v577_v0 = vld [vmem:[%s460_s14 + $0x20] sm:$0xff]  ;;  %v578_v1 = vld [vmem:[%s460_s14 + $0x28] sm:$0xff]  ;;  %v2765_v12 = vmov 256.0   ;;  %s2766_s20 = smov 1  }
  0x6f   : > { %v573_v2 = vld [vmem:[%s460_s14] sm:$0xff]  ;;  %v587_v3 = vadd.f32 %v578_v1, %v577_v0  ;;  %v574_v4 = vld [vmem:[%s460_s14 + $0x8] sm:$0xff]  ;;  %v579_v6 = vld [vmem:[%s460_s14 + $0x30] sm:$0xff]  ;;  %2440 = vrcp.f32 %v2765_v12  ;;  %s3586_s7 = sld [smem:[#allocation47_spill]]  ;;  %s3286_s23 = scalar_lea.vmem [#allocation14], %s3078_s25 }
  0x70   : > { %v581_v5 = vadd.f32 %v574_v4, %v573_v2  ;;  %v580_v7 = vld [vmem:[%s460_s14 + $0x38] sm:$0xff]  ;;  %v575_v8 = vld [vmem:[%s460_s14 + $0x10] sm:$0xff]  ;;  %v1994_v47 = vld [vmem:[#allocation11 + $0xe0] sm:$0xf]  ;;  %s2768_s2 = smov 127   ;;  %s3587_s1 = sld [smem:[#allocation48_spill]] }
  0x71   : > { %588 = vadd.xlane.f32.xlu1 %v587_v3  ;;  %v576_v9 = vld [vmem:[%s460_s14 + $0x18] sm:$0xff]  ;;  %v590_v10 = vadd.f32 %v580_v7, %v579_v6  ;;  %v2122_v49 = vld [vmem:[#allocation11 + $0x1e0] sm:$0xf]  ;;  %v2183_v52 = vld [vmem:[#allocation11 + $0xe4] sm:$0xf]  ;;  %s3409_s16 = scalar_lea.vmem [#allocation13], %s3078_s25 }
  0x72   : > { %582 = vadd.xlane.f32.xlu0 %v581_v5  ;;  %v584_v11 = vadd.f32 %v576_v9, %v575_v8  ;;  %v2185_v48 = vld [vmem:[#allocation11 + $0xec] sm:$0xf0]  ;;  %v1996_v53 = vld [vmem:[#allocation11 + $0xf0] sm:$0xf0]  ;;  %v2215_v56 = vld [vmem:[#allocation11 + $0x1e4] sm:$0xf] }
  0x73   : > { %v1995_v50 = vor.u32 %v2185_v48, %v1994_v47  ;;  %v2217_v51 = vld [vmem:[#allocation11 + $0x1ec] sm:$0xf0]  ;;  %v1999_v55 = vor.u32 %v2183_v52, %v1996_v53  ;;  %v2124_v57 = vld [vmem:[#allocation11 + $0x1f0] sm:$0xf0]  ;;  %v1978_v59 = vld [vmem:[#allocation11 + $0xc0] sm:$0xf] }
  0x74   : > { %v2123_v54 = vor.u32 %v2217_v51, %v2122_v49  ;;  %v2127_v58 = vor.u32 %v2215_v56, %v2124_v57  ;;  %v2181_v60 = vld [vmem:[#allocation11 + $0xcc] sm:$0xf0]  ;;  %v2106_v61 = vld [vmem:[#allocation11 + $0x1c0] sm:$0xf]  ;;  %v2108_v5 = vld [vmem:[#allocation11 + $0x1d0] sm:$0xf0] }
  0x75   : > { %v2441_v13 = vpop.eup %2440  ;;  %1113 = vmatpush.bf16.msra.mxu0 %v1995_v50  ;;  %1151 = vmatpush.bf16.msra.mxu2 %v1999_v55  ;;  %v1979_v62 = vor.u32 %v2181_v60, %v1978_v59  ;;  %v2213_v63 = vld [vmem:[#allocation11 + $0x1cc] sm:$0xf0]  ;;  %v2175_v12 = vld [vmem:[#allocation11 + $0xa4] sm:$0xf]  ;;  %v2060_v50 = vld [vmem:[#allocation11 + $0x170] sm:$0xf0] }
  0x76   : > { %v594_v14 = vmul.f32 256.0, %v2441_v13  ;;  %vm598_vm0 = vweird.f32 %v2441_v13  ;;  %1132 = vmatpush.bf16.msra.mxu1 %v2123_v54  ;;  %1170 = vmatpush.bf16.msra.mxu3 %v2127_v58  ;;  %v2199_v49 = vld [vmem:[#allocation11 + $0x164] sm:$0xf]  ;;  %v1914_v52 = vld [vmem:[#allocation11 + $0x40] sm:$0xf]  ;;  %s1534_s9 = scalar_lea.sflag [#allocation4], %s3060_s3 }
  0x77   : > { %v2063_v51 = vor.u32 %v2199_v49, %v2060_v50  ;;  %v2165_v53 = vld [vmem:[#allocation11 + $0x4c] sm:$0xf0]  ;;  %v2042_v54 = vld [vmem:[#allocation11 + $0x140] sm:$0xf]  ;;  %v2163_v57 = vld [vmem:[#allocation11 + $0x44] sm:$0xf] }
  0x78   : > { %v595_v15 = vsub.f32 1.0, %v594_v14  ;;  %v1915_v55 = vor.u32 %v2165_v53, %v1914_v52  ;;  %v2197_v56 = vld [vmem:[#allocation11 + $0x14c] sm:$0xf0]  ;;  %v1916_v58 = vld [vmem:[#allocation11 + $0x50] sm:$0xf0]  ;;  %s1539_s15 = scalar_lea.sflag [#allocation15], %s3060_s3 }
  0x79   : > { %591 = vadd.xlane.f32.xlu1 %v590_v10  ;;  %1114 = vmatpush.bf16.msra.mxu0 %v1979_v62  ;;  %v2043_v59 = vor.u32 %v2197_v56, %v2042_v54  ;;  %v1919_v60 = vor.u32 %v2163_v57, %v1916_v58  ;;  %v2044_v62 = vld [vmem:[#allocation11 + $0x150] sm:$0xf0]  ;;  %v2132_v52 = vld [vmem:[#allocation11 + $0x1f8] sm:$0xf0]  ;;  %v1986_v53 = vld [vmem:[#allocation11 + $0xc8] sm:$0xf] }
  0x7a   : > { %585 = vadd.xlane.f32.xlu0 %v584_v11  ;;  %v596_v16 = vmul.f32 %v2441_v13, %v595_v15  ;;  %v2209_v11 = vld [vmem:[#allocation11 + $0x1ac] sm:$0xf0]  ;;  %v2182_v56 = vld [vmem:[#allocation11 + $0xd4] sm:$0xf0]  ;;  %v2114_v57 = vld [vmem:[#allocation11 + $0x1c8] sm:$0xf] }
  0x7b   : > { %v2214_v58 = vld [vmem:[#allocation11 + $0x1d4] sm:$0xf0] }
  0x7c   : > { %v597_v17 = vadd.f32 %v2441_v13, %v596_v16  ;;  %v2207_v16 = vld [vmem:[#allocation11 + $0x1a4] sm:$0xf] }
  0x7e   : > { %v3095_v18 = vsel %vm598_vm0, %v2441_v13, %v597_v17  ;;  %v1964_v13 = vld [vmem:[#allocation11 + $0xb0] sm:$0xf0] }
  0x7f   : > { %v1967_v15 = vor.u32 %v2175_v12, %v1964_v13  ;;  %v2092_v17 = vld [vmem:[#allocation11 + $0x1b0] sm:$0xf0]  ;;  %v1882_v12 = vld [vmem:[#allocation11] sm:$0xf] }
  0xe4   : > { %v589_v19 = vpop.xlane.xlu1 %588 }
  0xe5   : > { %v602_v20 = vmul.f32 %v3095_v18, %v589_v19  ;;  %v583_v21 = vpop.xlane.xlu0 %582  ;;  %v2095_v19 = vor.u32 %v2207_v16, %v2092_v17  ;;  %v2157_v16 = vld [vmem:[#allocation11 + $0xc] sm:$0xf0]  ;;  %v2010_v17 = vld [vmem:[#allocation11 + $0x100] sm:$0xf] }
  0xe6   : > { %v600_v22 = vmul.f32 %v3095_v18, %v583_v21  ;;  %v2173_v21 = vld [vmem:[#allocation11 + $0x8c] sm:$0xf0] }
  0xe7   : > { %v3099_v23 = vsub.f32 %v577_v0, %v602_v20  ;;  %v3101_v24 = vsub.f32 %v578_v1, %v602_v20  ;;  %v2179_v0 = vld [vmem:[#allocation11 + $0xc4] sm:$0xf]  ;;  %v1980_v1 = vld [vmem:[#allocation11 + $0xd0] sm:$0xf0]  ;;  %v1946_v20 = vld [vmem:[#allocation11 + $0x80] sm:$0xf] }
  0xe8   : > { %v3103_v25 = vsub.f32 %v573_v2, %v600_v22  ;;  %v3105_v26 = vsub.f32 %v574_v4, %v600_v22  ;;  %v2107_v2 = vor.u32 %v2213_v63, %v2106_v61  ;;  %v1983_v3 = vor.u32 %v2179_v0, %v1980_v1  ;;  %v2211_v4 = vld [vmem:[#allocation11 + $0x1c4] sm:$0xf]  ;;  %v2074_v22 = vld [vmem:[#allocation11 + $0x180] sm:$0xf]  ;;  %v2161_v1 = vld [vmem:[#allocation11 + $0x2c] sm:$0xf0] }
  0xe9   : > { %v616_v27 = vmul.f32 %v3099_v23, %v3099_v23  ;;  %v617_v28 = vmul.f32 %v3101_v24, %v3101_v24  ;;  %v2195_v61 = vld [vmem:[#allocation11 + $0x144] sm:$0xf]  ;;  %v1898_v0 = vld [vmem:[#allocation11 + $0x20] sm:$0xf] }
  0xea   : > { %v612_v29 = vmul.f32 %v3103_v25, %v3103_v25  ;;  %v613_v30 = vmul.f32 %v3105_v26, %v3105_v26  ;;  %1133 = vmatpush.bf16.msra.mxu1 %v2107_v2  ;;  %1152 = vmatpush.bf16.msra.mxu2 %v1983_v3  ;;  %v2047_v63 = vor.u32 %v2195_v61, %v2044_v62  ;;  %v2026_v2 = vld [vmem:[#allocation11 + $0x120] sm:$0xf]  ;;  %v2180_v62 = vld [vmem:[#allocation11 + $0xcc] sm:$0xf] }
  0xeb   : > { %v626_v31 = vadd.f32 %v617_v28, %v616_v27  ;;  %v1947_v27 = vor.u32 %v2173_v21, %v1946_v20  ;;  %v2205_v28 = vld [vmem:[#allocation11 + $0x18c] sm:$0xf0]  ;;  %v1899_v3 = vor.u32 %v2161_v1, %v1898_v0  ;;  %v1883_v21 = vor.u32 %v2157_v16, %v1882_v12  ;;  %v1972_v16 = vld [vmem:[#allocation11 + $0xb8] sm:$0xf0] }
  0xec   : > { %v592_v32 = vpop.xlane.xlu1 %591  ;;  %v620_v33 = vadd.f32 %v613_v30, %v612_v29  ;;  %v2171_v29 = vld [vmem:[#allocation11 + $0x84] sm:$0xf]  ;;  %v1948_v30 = vld [vmem:[#allocation11 + $0x90] sm:$0xf0]  ;;  %v2115_v61 = vor.u32 %v2214_v58, %v2114_v57 }
  0xed   : > { %v603_v34 = vmul.f32 %v3095_v18, %v592_v32  ;;  %v586_v35 = vpop.xlane.xlu0 %585  ;;  %627 = vadd.xlane.f32.xlu0 %v626_v31  ;;  %v2075_v31 = vor.u32 %v2205_v28, %v2074_v22  ;;  %v1951_v32 = vor.u32 %v2171_v29, %v1948_v30  ;;  %v1884_v28 = vld [vmem:[#allocation11 + $0x10] sm:$0xf0]  ;;  %v2187_v29 = vld [vmem:[#allocation11 + $0x104] sm:$0xf] }
  0xee   : > { %v601_v36 = vmul.f32 %v3095_v18, %v586_v35  ;;  %621 = vadd.xlane.f32.xlu2 %v620_v33  ;;  %1153 = vmatpush.bf16.msra.mxu2 %v1967_v15  ;;  %v2203_v33 = vld [vmem:[#allocation11 + $0x184] sm:$0xf] }
  0xef   : > { %v3117_v37 = vsub.f32 %v579_v6, %v603_v34  ;;  %v3119_v38 = vsub.f32 %v580_v7, %v603_v34  ;;  %v2111_v6 = vor.u32 %v2211_v4, %v2108_v5  ;;  %v1962_v7 = vld [vmem:[#allocation11 + $0xa0] sm:$0xf]  ;;  %v2076_v34 = vld [vmem:[#allocation11 + $0x190] sm:$0xf0]  ;;  %v2193_v4 = vld [vmem:[#allocation11 + $0x12c] sm:$0xf0] }
  0xf0   : > { %v3121_v39 = vsub.f32 %v575_v8, %v601_v36  ;;  %v3123_v40 = vsub.f32 %v576_v9, %v601_v36  ;;  %v2177_v8 = vld [vmem:[#allocation11 + $0xac] sm:$0xf0]  ;;  %v2090_v9 = vld [vmem:[#allocation11 + $0x1a0] sm:$0xf]  ;;  %v2079_v35 = vor.u32 %v2203_v33, %v2076_v34  ;;  %v2159_v5 = vld [vmem:[#allocation11 + $0x24] sm:$0xf] }
  0xf1   : > { %v618_v41 = vmul.f32 %v3117_v37, %v3117_v37  ;;  %v619_v42 = vmul.f32 %v3119_v38, %v3119_v38  ;;  %1171 = vmatpush.bf16.msra.mxu3 %v2111_v6  ;;  %v1963_v10 = vor.u32 %v2177_v8, %v1962_v7  ;;  %v2091_v14 = vor.u32 %v2209_v11, %v2090_v9  ;;  %v1930_v36 = vld [vmem:[#allocation11 + $0x60] sm:$0xf]  ;;  %v1900_v6 = vld [vmem:[#allocation11 + $0x30] sm:$0xf0] }
  0xf2   : > { %v614_v43 = vmul.f32 %v3121_v39, %v3121_v39  ;;  %v615_v44 = vmul.f32 %v3123_v40, %v3123_v40  ;;  %1154 = vmatpush.bf16.msra.mxu2 %v1951_v32  ;;  %v2027_v8 = vor.u32 %v2193_v4, %v2026_v2  ;;  %v1903_v9 = vor.u32 %v2159_v5, %v1900_v6  ;;  %v2028_v11 = vld [vmem:[#allocation11 + $0x130] sm:$0xf0]  ;;  %v2212_v2 = vld [vmem:[#allocation11 + $0x1cc] sm:$0xf]  ;;  %v1970_v5 = vld [vmem:[#allocation11 + $0xa8] sm:$0xf] }
  0xf3   : > { %v629_v45 = vadd.f32 %v619_v42, %v618_v41  ;;  %1115 = vmatpush.bf16.msra.mxu0 %v1963_v10  ;;  %1134 = vmatpush.bf16.msra.mxu1 %v2091_v14  ;;  %v2169_v41 = vld [vmem:[#allocation11 + $0x6c] sm:$0xf0]  ;;  %v2058_v42 = vld [vmem:[#allocation11 + $0x160] sm:$0xf]  ;;  %v2191_v10 = vld [vmem:[#allocation11 + $0x124] sm:$0xf] }
  0xf4   : > { %v623_v46 = vadd.f32 %v615_v44, %v614_v43  ;;  %v1931_v43 = vor.u32 %v2169_v41, %v1930_v36  ;;  %v2201_v44 = vld [vmem:[#allocation11 + $0x16c] sm:$0xf0]  ;;  %v2031_v15 = vor.u32 %v2191_v10, %v2028_v11  ;;  %v2186_v36 = vld [vmem:[#allocation11 + $0xf4] sm:$0xf0]  ;;  %v2130_v41 = vld [vmem:[#allocation11 + $0x1e8] sm:$0xf] }
  0xf5   : > { %630 = vadd.xlane.f32.xlu1 %v629_v45  ;;  %1172 = vmatpush.bf16.msra.mxu3 %v2095_v19  ;;  %v2167_v45 = vld [vmem:[#allocation11 + $0x64] sm:$0xf]  ;;  %v2059_v47 = vor.u32 %v2201_v44, %v2058_v42  ;;  %v2189_v19 = vld [vmem:[#allocation11 + $0x10c] sm:$0xf0]  ;;  %v2218_v44 = vld [vmem:[#allocation11 + $0x1f4] sm:$0xf0] }
  0xf6   : > { %624 = vadd.xlane.f32.xlu2 %v623_v46  ;;  %v1932_v46 = vld [vmem:[#allocation11 + $0x70] sm:$0xf0]  ;;  %v2011_v22 = vor.u32 %v2189_v19, %v2010_v17  ;;  %v2131_v49 = vor.u32 %v2218_v44, %v2130_v41  ;;  %v2178_v6 = vld [vmem:[#allocation11 + $0xb4] sm:$0xf0]  ;;  %v2208_v17 = vld [vmem:[#allocation11 + $0x1ac] sm:$0xf] }
  0xf7   : > { %1116 = vmatpush.bf16.msra.mxu0 %v1947_v27  ;;  %1135 = vmatpush.bf16.msra.mxu1 %v2075_v31  ;;  %v1935_v48 = vor.u32 %v2167_v45, %v1932_v46  ;;  %v2155_v27 = vld [vmem:[#allocation11 + $0x4] sm:$0xf]  ;;  %v2012_v31 = vld [vmem:[#allocation11 + $0x110] sm:$0xf0]  ;;  %v2184_v45 = vld [vmem:[#allocation11 + $0xec] sm:$0xf] }
  0xf8   : > { %v1887_v30 = vor.u32 %v2155_v27, %v1884_v28  ;;  %v2015_v33 = vor.u32 %v2187_v29, %v2012_v31  ;;  %v2004_v46 = vld [vmem:[#allocation11 + $0xf8] sm:$0xf0]  ;;  %v2210_v10 = vld [vmem:[#allocation11 + $0x1b4] sm:$0xf0]  ;;  %v2172_v41 = vld [vmem:[#allocation11 + $0x8c] sm:$0xf] }
  0xf9   : > { %1173 = vmatpush.bf16.msra.mxu3 %v2079_v35  ;;  %1155 = vmatpush.bf16.msra.mxu2 %v1935_v48  ;;  %v2002_v35 = vld [vmem:[#allocation11 + $0xe8] sm:$0xf]  ;;  %v2007_v50 = vor.u32 %v2184_v45, %v2004_v46  ;;  %v2174_v29 = vld [vmem:[#allocation11 + $0x94] sm:$0xf0]  ;;  %v1956_v45 = vld [vmem:[#allocation11 + $0x98] sm:$0xf0] }
  0xfa   : > { %v2204_v46 = vld [vmem:[#allocation11 + $0x18c] sm:$0xf] }
  0xfb   : > { %1117 = vmatpush.bf16.msra.mxu0 %v1931_v43  ;;  %1136 = vmatpush.bf16.msra.mxu1 %v2059_v47  ;;  %v2003_v43 = vor.u32 %v2186_v36, %v2002_v35  ;;  %v2206_v36 = vld [vmem:[#allocation11 + $0x194] sm:$0xf0] }
  0xfd   : > { %1174 = vmatpush.bf16.msra.mxu3 %v2063_v51  ;;  %1156 = vmatpush.bf16.msra.mxu2 %v1919_v60  ;;  %v2216_v51 = vld [vmem:[#allocation11 + $0x1ec] sm:$0xf]  ;;  %v1987_v60 = vor.u32 %v2182_v56, %v1986_v53 }
  0xff   : > { %1118 = vmatpush.bf16.msra.mxu0 %v1915_v55  ;;  %1137 = vmatpush.bf16.msra.mxu1 %v2043_v59  ;;  %v2135_v55 = vor.u32 %v2216_v51, %v2132_v52 }
 0x101   : > { %1175 = vmatpush.bf16.msra.mxu3 %v2047_v63  ;;  %1157 = vmatpush.bf16.msra.mxu2 %v1903_v9  ;;  %v1988_v63 = vld [vmem:[#allocation11 + $0xd8] sm:$0xf0]  ;;  %v2098_v9 = vld [vmem:[#allocation11 + $0x1a8] sm:$0xf] }
 0x103   : > { %1119 = vmatpush.bf16.msra.mxu0 %v1899_v3  ;;  %1138 = vmatpush.bf16.msra.mxu1 %v2027_v8  ;;  %v2116_v3 = vld [vmem:[#allocation11 + $0x1d8] sm:$0xf0] }
 0x104   : > { %v2119_v8 = vor.u32 %v2212_v2, %v2116_v3  ;;  %v2202_v3 = vld [vmem:[#allocation11 + $0x174] sm:$0xf0] }
 0x105   : > { %1176 = vmatpush.bf16.msra.mxu3 %v2031_v15  ;;  %1158 = vmatpush.bf16.msra.mxu2 %v1887_v30  ;;  %v2176_v15 = vld [vmem:[#allocation11 + $0xac] sm:$0xf]  ;;  %v2082_v30 = vld [vmem:[#allocation11 + $0x188] sm:$0xf] }
 0x106   : > { %v1975_v19 = vor.u32 %v2176_v15, %v1972_v16  ;;  %v2083_v44 = vor.u32 %v2206_v36, %v2082_v30 }
 0x107   : > { %1120 = vmatpush.bf16.msra.mxu0 %v1883_v21  ;;  %1139 = vmatpush.bf16.msra.mxu1 %v2011_v22  ;;  %v1954_v21 = vld [vmem:[#allocation11 + $0x88] sm:$0xf] }
 0x108   : > { %v1955_v35 = vor.u32 %v2174_v29, %v1954_v21  ;;  %v2050_v21 = vld [vmem:[#allocation11 + $0x148] sm:$0xf] }
 0x109   : > { %1177 = vmatpush.bf16.msra.mxu3 %v2015_v33  ;;  %1227 = vmatpush.bf16.msrb.mxu2 %v2007_v50  ;;  %v571_v33 = vld [vmem:[%s470_s26] sm:$0x3]  ;;  %v2084_v50 = vld [vmem:[#allocation11 + $0x198] sm:$0xf0] }
 0x10a   : > { %v2087_v53 = vor.u32 %v2204_v46, %v2084_v50  ;;  %v3179_v57 = vperm.slane %v571_v33, 0  ;;  %v2160_v50 = vld [vmem:[#allocation11 + $0x2c] sm:$0xf] }
 0x10b   : > { %1189 = vmatpush.bf16.msrb.mxu0 %v2003_v43  ;;  %1208 = vmatpush.bf16.msrb.mxu1 %v2131_v49  ;;  %v1959_v49 = vor.u32 %v2172_v41, %v1956_v45  ;;  %v2162_v41 = vld [vmem:[#allocation11 + $0x34] sm:$0xf0] }
 0x10d   : > { %1246 = vmatpush.bf16.msrb.mxu3 %v2135_v55 }
 0x10f   : > { %1190 = vmatpush.bf16.msrb.mxu0 %v1987_v60  ;;  %1209 = vmatpush.bf16.msrb.mxu1 %v2115_v61  ;;  %v1938_v60 = vld [vmem:[#allocation11 + $0x68] sm:$0xf]  ;;  %v2170_v61 = vld [vmem:[#allocation11 + $0x74] sm:$0xf0] }
 0x110   : > { %v1939_v2 = vor.u32 %v2170_v61, %v1938_v60  ;;  %v1890_v60 = vld [vmem:[#allocation11 + $0x8] sm:$0xf]  ;;  %v2158_v61 = vld [vmem:[#allocation11 + $0x14] sm:$0xf0] }
 0x111   : > { %1247 = vmatpush.bf16.msrb.mxu3 %v2119_v8  ;;  %v2200_v8 = vld [vmem:[#allocation11 + $0x16c] sm:$0xf] }
 0x160   : > { %v628_v7 = vpop.xlane.xlu0 %627 }
 0x161   : > { %v622_v13 = vpop.xlane.xlu2 %621  ;;  %v634_v14 = vmul.f32 %v628_v7, %v3095_v18  ;;  %v572_v7 = vld [vmem:[%s480_s8] sm:$0x3] }
 0x162   : > { %v632_v20 = vmul.f32 %v622_v13, %v3095_v18  ;;  %v1971_v13 = vor.u32 %v2178_v6, %v1970_v5  ;;  %v636_v27 = vadd.f32 1.0, %v572_v7  ;;  %v3188_v6 = vperm.slane %v571_v33, 1  ;;  %v1940_v7 = vld [vmem:[#allocation11 + $0x78] sm:$0xf0] }
 0x163   : > { %v3137_v34 = vadd.f32 1e-06, %v634_v14  ;;  %v2099_v14 = vor.u32 %v2210_v10, %v2098_v9  ;;  %v2052_v33 = vld [vmem:[#allocation11 + $0x158] sm:$0xf0] }
 0x164   : > { %v3135_v32 = vadd.f32 1e-06, %v632_v20  ;;  %v2100_v20 = vld [vmem:[#allocation11 + $0x1b8] sm:$0xf0]  ;;  %1191 = vmatpush.bf16.msrb.mxu0 %v1971_v13  ;;  %v3177_v56 = vperm.slane %v636_v27, 0 }
 0x165   : > { %v2103_v28 = vor.u32 %v2208_v17, %v2100_v20  ;;  %1210 = vmatpush.bf16.msrb.mxu1 %v2099_v14  ;;  %v2068_v13 = vld [vmem:[#allocation11 + $0x178] sm:$0xf0]  ;;  %v1922_v14 = vld [vmem:[#allocation11 + $0x48] sm:$0xf]  ;;  %v2166_v20 = vld [vmem:[#allocation11 + $0x54] sm:$0xf0]  ;;  %vm667_vm9 = vweird.f32 %v3137_v34 }
 0x166   : > { %2442 = vrsqrt.f32 %v3135_v32  ;;  %vm647_vm2 = vweird.f32 %v3135_v32 }
 0x167   : > { %2444 = vrsqrt.f32 %v3137_v34  ;;  %1248 = vmatpush.bf16.msrb.mxu3 %v2103_v28  ;;  %v1924_v28 = vld [vmem:[#allocation11 + $0x58] sm:$0xf0] }
 0x168   : > { %v631_v42 = vpop.xlane.xlu1 %630  ;;  %1192 = vmatpush.bf16.msrb.mxu0 %v1955_v35  ;;  %v1906_v35 = vld [vmem:[#allocation11 + $0x28] sm:$0xf] }
 0x169   : > { %v635_v47 = vmul.f32 %v631_v42, %v3095_v18  ;;  %v625_v48 = vpop.xlane.xlu2 %624  ;;  %1211 = vmatpush.bf16.msrb.mxu1 %v2083_v44  ;;  %v2194_v44 = vld [vmem:[#allocation11 + $0x134] sm:$0xf0] }
 0x16a   : > { %v633_v54 = vmul.f32 %v625_v48, %v3095_v18  ;;  %v1991_v18 = vor.u32 %v2180_v62, %v1988_v63  ;;  %v2066_v62 = vld [vmem:[#allocation11 + $0x168] sm:$0xf] }
 0x16b   : > { %v3143_v59 = vadd.f32 1e-06, %v635_v47  ;;  %1249 = vmatpush.bf16.msrb.mxu3 %v2087_v53 }
 0x16c   : > { %v3145_v0 = vpop.eup %2442  ;;  %v3147_v1 = vadd.f32 1e-06, %v633_v54  ;;  %1228 = vmatpush.bf16.msrb.mxu2 %v1991_v18  ;;  %v3186_v18 = vperm.slane %v636_v27, 1  ;;  %1193 = vmatpush.bf16.msrb.mxu0 %v1939_v2  ;;  %v2164_v27 = vld [vmem:[#allocation11 + $0x4c] sm:$0xf] }
 0x16d   : > { %v642_v4 = vmul.f32 %v3145_v0, %v3135_v32  ;;  %2446 = vrsqrt.f32 %v3143_v59  ;;  %v3155_v11 = vpop.eup %2444  ;;  %vm648_vm1 = vweird.f32 %v3145_v0  ;;  %v1927_v30 = vor.u32 %v2164_v27, %v1924_v28  ;;  %v2190_v2 = vld [vmem:[#allocation11 + $0x114] sm:$0xf0] }
 0x16e   : > { %2448 = vrsqrt.f32 %v3147_v1  ;;  %v662_v31 = vmul.f32 %v3155_v11, %v3137_v34  ;;  %vm649_vm3 = vmor %vm647_vm2, %vm648_vm1  ;;  %vm657_vm5 = vweird.f32 %v3147_v1  ;;  %vm677_vm7 = vweird.f32 %v3143_v59 }
 0x16f   : > { %v643_v12 = vmul.f32 %v3145_v0, %v642_v4  ;;  %v2168_v4 = vld [vmem:[#allocation11 + $0x6c] sm:$0xf]  ;;  %vm668_vm10 = vweird.f32 %v3155_v11 }
 0x170   : > { %1229 = vmatpush.bf16.msrb.mxu2 %v1975_v19  ;;  %v663_v54 = vmul.f32 %v3155_v11, %v662_v31  ;;  %v2196_v31 = vld [vmem:[#allocation11 + $0x14c] sm:$0xf]  ;;  %vm669_vm12 = vmor %vm667_vm9, %vm668_vm10 }
 0x171   : > { %v644_v22 = vmul.f32 0.5, %v643_v12  ;;  %v1943_v12 = vor.u32 %v2168_v4, %v1940_v7  ;;  %v2055_v36 = vor.u32 %v2196_v31, %v2052_v33  ;;  %v2156_v4 = vld [vmem:[#allocation11 + $0xc] sm:$0xf]  ;;  %v1892_v7 = vld [vmem:[#allocation11 + $0x18] sm:$0xf0] }
 0x172   : > { %v3191_v10 = vmul.f32 0.5, %v663_v54 }
 0x173   : > { %v3162_v42 = vpop.eup %2446  ;;  %v645_v43 = vsub.f32 1.5, %v644_v22  ;;  %v2198_v22 = vld [vmem:[#allocation11 + $0x154] sm:$0xf0] }
 0x174   : > { %v3165_v47 = vpop.eup %2448  ;;  %v672_v48 = vmul.f32 %v3162_v42, %v3143_v59  ;;  %1230 = vmatpush.bf16.msrb.mxu2 %v1959_v49  ;;  %v2051_v29 = vor.u32 %v2198_v22, %v2050_v21  ;;  %v1907_v49 = vor.u32 %v2162_v41, %v1906_v35  ;;  %vm678_vm8 = vweird.f32 %v3162_v42 }
 0x175   : > { %v646_v51 = vmul.f32 %v3145_v0, %v645_v43  ;;  %v652_v52 = vmul.f32 %v3165_v47, %v3147_v1  ;;  %vm658_vm4 = vweird.f32 %v3165_v47  ;;  %v1923_v1 = vor.u32 %v2166_v20, %v1922_v14  ;;  %v2034_v43 = vld [vmem:[#allocation11 + $0x128] sm:$0xf]  ;;  %vm679_vm11 = vmor %vm677_vm7, %vm678_vm8 }
 0x176   : > { %v673_v55 = vmul.f32 %v3162_v42, %v672_v48  ;;  %vm3198_vm6 = vmor %vm657_vm5, %vm658_vm4 }
 0x177   : > { %v650_v58 = vsel %vm649_vm3, %v3145_v0, %v646_v51  ;;  %v653_v32 = vmul.f32 %v3165_v47, %v652_v52  ;;  %v2067_v0 = vor.u32 %v2202_v3, %v2066_v62  ;;  %1194 = vmatpush.bf16.msrb.mxu0 %v1923_v1  ;;  %v1908_v51 = vld [vmem:[#allocation11 + $0x38] sm:$0xf0]  ;;  %v2192_v52 = vld [vmem:[#allocation11 + $0x12c] sm:$0xf]  ;;  %v1891_v3 = vor.u32 %v2158_v61, %v1890_v60 }
 0x178   : > { %v3183_v63 = vmul.f32 0.5, %v673_v55  ;;  %v681_v9 = vmul.f32 %v650_v58, %v3103_v25  ;;  %v682_v15 = vmul.f32 %v650_v58, %v3105_v26  ;;  %v2071_v25 = vor.u32 %v2200_v8, %v2068_v13  ;;  %1231 = vmatpush.bf16.msrb.mxu2 %v1943_v12  ;;  %v2188_v8 = vld [vmem:[#allocation11 + $0x10c] sm:$0xf] }
 0x179   : > { %v654_v5 = vmul.f32 0.5, %v653_v32  ;;  %1212 = vmatpush.bf16.msrb.mxu1 %v2067_v0  ;;  %v2035_v55 = vor.u32 %v2194_v44, %v2034_v43  ;;  %v1911_v58 = vor.u32 %v2160_v50, %v1908_v51  ;;  %v2036_v32 = vld [vmem:[#allocation11 + $0x138] sm:$0xf0] }
 0x17a   : > { %v675_v16 = vsub.f32 1.5, %v3183_v63  ;;  %1250 = vmatpush.bf16.msrb.mxu3 %v2071_v25  ;;  %v694_v46 = vmul.f32 %v3177_v56, %v681_v9  ;;  %v695_v48 = vmul.f32 %v3186_v18, %v682_v15  ;;  %v2039_v62 = vor.u32 %v2192_v52, %v2036_v32  ;;  %v2018_v63 = vld [vmem:[#allocation11 + $0x108] sm:$0xf]  ;;  %v2020_v9 = vld [vmem:[#allocation11 + $0x118] sm:$0xf0] }
 0x17b   : > { %v655_v17 = vsub.f32 1.5, %v654_v5  ;;  %1195 = vmatpush.bf16.msrb.mxu0 %v1907_v49  ;;  %v2019_v0 = vor.u32 %v2190_v2, %v2018_v63  ;;  %v2023_v19 = vor.u32 %v2188_v8, %v2020_v9 }
 0x17c   : > { %1232 = vmatpush.bf16.msrb.mxu2 %v1927_v30  ;;  %v676_v5 = vmul.f32 %v3162_v42, %v675_v16  ;;  %v708_v13 = vadd.f32 %v3188_v6, %v695_v48 }
 0x17d   : > { %v656_v26 = vmul.f32 %v3165_v47, %v655_v17  ;;  %1213 = vmatpush.bf16.msrb.mxu1 %v2051_v29  ;;  %v1895_v17 = vor.u32 %v2156_v4, %v1892_v7 }
 0x17e   : > { %1251 = vmatpush.bf16.msrb.mxu3 %v2055_v36  ;;  %v680_v25 = vsel %vm679_vm11, %v3162_v42, %v676_v5 }
 0x17f   : > { %v660_v45 = vsel %vm3198_vm6, %v3165_v47, %v656_v26  ;;  %v665_v47 = vsub.f32 1.5, %v3191_v10  ;;  %v707_v10 = vadd.f32 %v3179_v57, %v694_v46  ;;  %1196 = vmatpush.bf16.msrb.mxu0 %v1891_v3  ;;  %v687_v21 = vmul.f32 %v680_v25, %v3117_v37 }
 0x180   : > { %v683_v53 = vmul.f32 %v660_v45, %v3121_v39  ;;  %v684_v54 = vmul.f32 %v660_v45, %v3123_v40  ;;  %1233 = vmatpush.bf16.msrb.mxu2 %v1911_v58  ;;  %v688_v1 = vmul.f32 %v680_v25, %v3119_v38 }
 0x181   : > { %1214 = vmatpush.bf16.msrb.mxu1 %v2035_v55  ;;  %v666_v15 = vmul.f32 %v3155_v11, %v665_v47  ;;  %v700_v27 = vmul.f32 %v3177_v56, %v687_v21 }
 0x182   : > { %v696_v39 = vmul.f32 %v3177_v56, %v683_v53  ;;  %v697_v40 = vmul.f32 %v3186_v18, %v684_v54  ;;  %1252 = vmatpush.bf16.msrb.mxu3 %v2039_v62  ;;  %v701_v42 = vmul.f32 %v3186_v18, %v688_v1 }
 0x183   : > { %v670_v20 = vsel %vm669_vm12, %v3155_v11, %v666_v15  ;;  %v713_v26 = vadd.f32 %v3179_v57, %v700_v27 }
 0x184   : > { %v709_v12 = vadd.f32 %v3179_v57, %v696_v39  ;;  %v710_v14 = vadd.f32 %v3188_v6, %v697_v40  ;;  %1234 = vmatpush.bf16.msrb.mxu2 %v1895_v17  ;;  %v685_v34 = vmul.f32 %v670_v20, %v3099_v23  ;;  %v686_v22 = vmul.f32 %v670_v20, %v3101_v24 }
 0x185   : > { %1215 = vmatpush.bf16.msrb.mxu1 %v2019_v0  ;;  %v714_v37 = vadd.f32 %v3188_v6, %v701_v42  ;;  %v1265_v24 = vlaneseq }
 0x186   : > { %v715_v16 = vpack.c.bf16 %v709_v12, %v707_v10  ;;  %v716_v59 = vpack.c.bf16 %v710_v14, %v708_v13  ;;  %1253 = vmatpush.bf16.msrb.mxu3 %v2023_v19  ;;  %v698_v28 = vmul.f32 %v3177_v56, %v685_v34  ;;  %v699_v11 = vmul.f32 %v3186_v18, %v686_v22  ;;  %v783_v56 = vld [vmem:[%s3586_s7] sm:$0xf] }
 0x187   : > { %v3245_v31 = vand.u32 127, %v1265_v24  ;;  %v786_v36 = vperm.slane %v783_v56, 1  ;;  %v787_v15 = vperm.slane %v783_v56, 2  ;;  %v788_v34 = vperm.slane %v783_v56, 3 }
 0x188   : > { %1121 = vmatmul.bf16.vlgmr.msra.gmra.mxu0 %v715_v16  ;;  %1140 = vmatmul.bf16.vlgmr.msra.gmra.mxu1 %v716_v59  ;;  %v711_v38 = vadd.f32 %v3179_v57, %v698_v28  ;;  %v712_v29 = vadd.f32 %v3188_v6, %v699_v11  ;;  %v3252_v57 = vperm.slane %v783_v56, 0  ;;  %v2767_v28 = vmov 0  }
 0x189   : > { %1159 = vmatmul.bf16.vlgmr.msra.gmra.mxu2 %v715_v16  ;;  %1178 = vmatmul.bf16.vlgmr.msra.gmra.mxu3 %v716_v59 }
 0x18a   : > { %v717_v30 = vpack.c.bf16 %v713_v26, %v711_v38  ;;  %v718_v23 = vpack.c.bf16 %v714_v37, %v712_v29  ;;  %1267 = vrot.lane.b32.xlu2 %v3245_v31, %s2766_s20 }
 0x198   : > { %1126 = vmatmul.bf16.gmra.mxu0 %v717_v30  ;;  %1145 = vmatmul.bf16.gmra.mxu1 %v718_v23 }
 0x199   : > { %1164 = vmatmul.bf16.gmra.mxu2 %v717_v30  ;;  %1183 = vmatmul.bf16.gmra.mxu3 %v718_v23 }
 0x1a8   : > { %1197 = vmatmul.bf16.vlgmr.msrb.gmra.mxu0 %v715_v16  ;;  %1216 = vmatmul.bf16.vlgmr.msrb.gmra.mxu1 %v716_v59 }
 0x1a9   : > { %1235 = vmatmul.bf16.vlgmr.msrb.gmra.mxu2 %v715_v16  ;;  %1254 = vmatmul.bf16.vlgmr.msrb.gmra.mxu3 %v716_v59 }
 0x1b8   : > { %1202 = vmatmul.bf16.gmra.mxu0 %v717_v30  ;;  %1221 = vmatmul.bf16.gmra.mxu1 %v718_v23 }
 0x1b9   : > { %1240 = vmatmul.bf16.gmra.mxu2 %v717_v30  ;;  %1259 = vmatmul.bf16.gmra.mxu3 %v718_v23 }
 0x1e4   : > { %v1268_v59 = vpop.permute.xlu2 %1267 }
 0x1e5   : > { %vm1269_vm13 = vcmp.eq.s32.totalorder %v1268_v59, 0 }
 0x1e6   : > { %v1375_v11 = vsel %vm1269_vm13, 1, %v2767_v28 }
 0x205   : > { %v1122_v18 = vpop.f32.mrf.mxu0  ;;  %v1141_v6 = vpop.f32.mrf.mxu1 }
 0x206   : > { %v1123_v33 = vadd.f32 %v1122_v18, %v3252_v57 }
 0x208   : > { %v3255_v35 = vadd.f32 %v1141_v6, %v1123_v33 }
 0x20a   : > { %v1281_v41 = vmul.f32 %v3255_v35, %v3255_v35 }
 0x20c   : > { %v1160_v43 = vpop.f32.mrf.mxu2  ;;  %v1179_v44 = vpop.f32.mrf.mxu3  ;;  %1285 = vadd.xlane.f32.xlu0 %v1281_v41 }
 0x20d   : > { %v1161_v45 = vadd.f32 %v1160_v43, %v786_v36  ;;  %v1124_v46 = vpop.f32.mrf.mxu0  ;;  %v1143_v48 = vpop.f32.mrf.mxu1 }
 0x20e   : > { %v1125_v49 = vadd.f32 %v1124_v46, %v3252_v57 }
 0x20f   : > { %v3260_v50 = vadd.f32 %v1179_v44, %v1161_v45 }
 0x210   : > { %v3262_v51 = vadd.f32 %v1143_v48, %v1125_v49 }
 0x211   : > { %v1415_v53 = vmul.f32 %v3260_v50, %v3260_v50 }
 0x212   : > { %v1282_v52 = vmul.f32 %v3262_v51, %v3262_v51 }
 0x214   : > { %v1162_v54 = vpop.f32.mrf.mxu2  ;;  %v1181_v55 = vpop.f32.mrf.mxu3  ;;  %1287 = vadd.xlane.f32.xlu1 %v1282_v52  ;;  %1419 = vadd.xlane.f32.xlu0 %v1415_v53 }
 0x215   : > { %v1163_v58 = vadd.f32 %v1162_v54, %v786_v36  ;;  %v1127_v32 = vpop.f32.mrf.mxu0  ;;  %v1146_v60 = vpop.f32.mrf.mxu1 }
 0x216   : > { %v1128_v61 = vadd.f32 %v1127_v32, %v3252_v57 }
 0x217   : > { %v3269_v47 = vadd.f32 %v1181_v55, %v1163_v58 }
 0x218   : > { %v3271_v62 = vadd.f32 %v1146_v60, %v1128_v61 }
 0x219   : > { %v1416_v63 = vmul.f32 %v3269_v47, %v3269_v47 }
 0x21a   : > { %v1283_v2 = vmul.f32 %v3271_v62, %v3271_v62 }
 0x21c   : > { %v1165_v39 = vpop.f32.mrf.mxu2  ;;  %v1184_v40 = vpop.f32.mrf.mxu3  ;;  %1421 = vadd.xlane.f32.xlu1 %v1416_v63  ;;  %1289 = vadd.xlane.f32.xlu0 %v1283_v2  ;;  %v2769_v2 = vmov 128.0  }
 0x21d   : > { %v1166_v3 = vadd.f32 %v1165_v39, %v786_v36  ;;  %v1129_v4 = vpop.f32.mrf.mxu0  ;;  %v1148_v5 = vpop.f32.mrf.mxu1  ;;  %2450 = vrcp.f32 %v2769_v2 }
 0x21e   : > { %v1130_v60 = vadd.f32 %v1129_v4, %v3252_v57 }
 0x21f   : > { %v3277_v0 = vadd.f32 %v1184_v40, %v1166_v3 }
 0x220   : > { %v3294_v61 = vadd.f32 %v1148_v5, %v1130_v60 }
 0x221   : > { %v1417_v7 = vmul.f32 %v3277_v0, %v3277_v0 }
 0x222   : > { %v1284_v63 = vmul.f32 %v3294_v61, %v3294_v61 }
 0x223   : > { %1423 = vadd.xlane.f32.xlu2 %v1417_v7  ;;  %v2451_v39 = vpop.eup %2450 }
 0x224   : > { %v1167_v8 = vpop.f32.mrf.mxu2  ;;  %v1186_v9 = vpop.f32.mrf.mxu3  ;;  %v1294_v40 = vmul.f32 128.0, %v2451_v39  ;;  %vm1298_vm14 = vweird.f32 %v2451_v39 }
 0x225   : > { %v1168_v10 = vadd.f32 %v1167_v8, %v786_v36  ;;  %v1198_v12 = vpop.f32.mrf.mxu0  ;;  %v1217_v13 = vpop.f32.mrf.mxu1 }
 0x226   : > { %v1199_v17 = vadd.f32 %v1198_v12, %v787_v15  ;;  %v1295_v3 = vsub.f32 1.0, %v1294_v40 }
 0x227   : > { %v3281_v14 = vadd.f32 %v1186_v9, %v1168_v10 }
 0x228   : > { %v1218_v22 = vadd.f32 %v1217_v13, %v1199_v17  ;;  %v1296_v7 = vmul.f32 %v2451_v39, %v1295_v3 }
 0x229   : > { %v1418_v16 = vmul.f32 %v3281_v14, %v3281_v14 }
 0x22a   : > { %v1297_v8 = vadd.f32 %v2451_v39, %v1296_v7 }
 0x22b   : > { %1425 = vadd.xlane.f32.xlu0 %v1418_v16 }
 0x22c   : > { %v1236_v19 = vpop.f32.mrf.mxu2  ;;  %v1255_v25 = vpop.f32.mrf.mxu3  ;;  %v3298_v9 = vsel %vm1298_vm14, %v2451_v39, %v1297_v8 }
 0x22d   : > { %v1200_v20 = vpop.f32.mrf.mxu0  ;;  %v1219_v21 = vpop.f32.mrf.mxu1  ;;  %v1237_v26 = vadd.f32 %v1236_v19, %v788_v34 }
 0x22e   : > { %v1201_v1 = vadd.f32 %v1200_v20, %v787_v15 }
 0x22f   : > { %v1256_v24 = vadd.f32 %v1255_v25, %v1237_v26 }
 0x230   : > { %v1220_v27 = vadd.f32 %v1219_v21, %v1201_v1 }
 0x232   : > { %v2232_v42 = vpack.c.bf16 %v1220_v27, %v1218_v22 }
 0x234   : > { %2233 = vst [vmem:[%s3286_s23] sm:$0xff] %v2232_v42   ;;  %v1238_v37 = vpop.f32.mrf.mxu2  ;;  %v1257_v38 = vpop.f32.mrf.mxu3 }
 0x235   : > { %v1239_v29 = vadd.f32 %v1238_v37, %v788_v34  ;;  %v1203_v30 = vpop.f32.mrf.mxu0  ;;  %v1222_v23 = vpop.f32.mrf.mxu1  ;;  %1376 = vrot.lane.b32.xlu1 %v1375_v11, %s2768_s2 }
 0x236   : > { %v1204_v6 = vadd.f32 %v1203_v30, %v787_v15  ;;  %v3313_v30 = vld [vmem:[%s3587_s1] ss:$0 sm:$0xff] }
 0x237   : > { %v1258_v56 = vadd.f32 %v1257_v38, %v1239_v29 }
 0x238   : > { %v1223_v45 = vadd.f32 %v1222_v23, %v1204_v6 }
 0x239   : > { %v2252_v18 = vpack.c.bf16 %v1258_v56, %v1256_v24 }
 0x23b   : > { %2263 = vst [vmem:[%s3286_s23 + $0x10] sm:$0xff] %v2252_v18  }
 0x23c   : > { %v1241_v33 = vpop.f32.mrf.mxu2  ;;  %v1260_v36 = vpop.f32.mrf.mxu3 }
 0x23d   : > { %v1205_v41 = vpop.f32.mrf.mxu0  ;;  %v1224_v44 = vpop.f32.mrf.mxu1  ;;  %v1242_v49 = vadd.f32 %v1241_v33, %v788_v34 }
 0x23e   : > { %v1206_v43 = vadd.f32 %v1205_v41, %v787_v15 }
 0x23f   : > { %v1261_v55 = vadd.f32 %v1260_v36, %v1242_v49 }
 0x240   : > { %v1225_v46 = vadd.f32 %v1224_v44, %v1206_v43 }
 0x242   : > { %v2237_v48 = vpack.c.bf16 %v1225_v46, %v1223_v45 }
 0x244   : > { %2260 = vst [vmem:[%s3286_s23 + $0x8] sm:$0xff] %v2237_v48   ;;  %v1243_v52 = vpop.f32.mrf.mxu2  ;;  %v1262_v54 = vpop.f32.mrf.mxu3 }
 0x245   : > { %v1244_v53 = vadd.f32 %v1243_v52, %v788_v34 }
 0x247   : > { %v1263_v58 = vadd.f32 %v1262_v54, %v1244_v53 }
 0x249   : > { %v2257_v32 = vpack.c.bf16 %v1263_v58, %v1261_v55 }
 0x24b   : > { %2264 = vst [vmem:[%s3286_s23 + $0x18] sm:$0xff] %v2257_v32  }
 0x25f   : > { %1291 = vadd.xlane.f32.xlu1 %v1284_v63 }
 0x27f   : > { %v1286_v10 = vpop.xlane.xlu0 %1285 }
 0x280   : > { %v1300_v12 = vmul.f32 %v3298_v9, %v1286_v10 }
 0x282   : > { %v1304_v57 = vadd.f32 1e-06, %v1300_v12 }
 0x284   : > { %2452 = vrsqrt.f32 %v1304_v57  ;;  %vm1314_vm0 = vweird.f32 %v1304_v57 }
 0x287   : > { %v1288_v4 = vpop.xlane.xlu1 %1287  ;;  %v1420_v5 = vpop.xlane.xlu0 %1419 }
 0x288   : > { %v1301_v13 = vmul.f32 %v3298_v9, %v1288_v4  ;;  %v1427_v15 = vmul.f32 %v1420_v5, %v3298_v9  ;;  %v3335_v5 = vld [vmem:[%s3082_s30] sm:$0xff] }
 0x28a   : > { %v2453_v16 = vpop.eup %2452  ;;  %v1305_v59 = vadd.f32 1e-06, %v1301_v13  ;;  %v1431_v17 = vadd.f32 1e-06, %v1427_v15 }
 0x28b   : > { %v1309_v19 = vmul.f32 %v2453_v16, %v1304_v57  ;;  %vm1315_vm15 = vweird.f32 %v2453_v16 }
 0x28c   : > { %2454 = vrsqrt.f32 %v1305_v59  ;;  %vm1316_vm1 = vmor %vm1314_vm0, %vm1315_vm15  ;;  %vm1441_vm3 = vweird.f32 %v1431_v17  ;;  %vm1324_vm6 = vweird.f32 %v1305_v59 }
 0x28d   : > { %v1310_v25 = vmul.f32 %v2453_v16, %v1309_v19  ;;  %2456 = vrsqrt.f32 %v1431_v17 }
 0x28f   : > { %v1311_v20 = vmul.f32 0.5, %v1310_v25  ;;  %v1422_v21 = vpop.xlane.xlu1 %1421  ;;  %v1290_v1 = vpop.xlane.xlu0 %1289 }
 0x290   : > { %v1428_v34 = vmul.f32 %v1422_v21, %v3298_v9  ;;  %v1302_v22 = vmul.f32 %v3298_v9, %v1290_v1 }
 0x291   : > { %v1312_v27 = vsub.f32 1.5, %v1311_v20 }
 0x292   : > { %v2455_v42 = vpop.eup %2454  ;;  %v3305_v28 = vadd.f32 1e-06, %v1428_v34  ;;  %v3307_v11 = vadd.f32 1e-06, %v1302_v22 }
 0x293   : > { %v2457_v26 = vpop.eup %2456  ;;  %v1313_v37 = vmul.f32 %v2453_v16, %v1312_v27  ;;  %v1319_v38 = vmul.f32 %v2455_v42, %v1305_v59  ;;  %vm1325_vm5 = vweird.f32 %v2455_v42 }
 0x294   : > { %v1436_v29 = vmul.f32 %v2457_v26, %v1431_v17  ;;  %2458 = vrsqrt.f32 %v3305_v28  ;;  %vm1442_vm2 = vweird.f32 %v2457_v26  ;;  %vm1326_vm7 = vmor %vm1324_vm6, %vm1325_vm5  ;;  %vm1451_vm10 = vweird.f32 %v3305_v28 }
 0x295   : > { %v1320_v23 = vmul.f32 %v2455_v42, %v1319_v38  ;;  %2460 = vrsqrt.f32 %v3307_v11  ;;  %v1317_v24 = vsel %vm1316_vm1, %v2453_v16, %v1313_v37  ;;  %vm1443_vm4 = vmor %vm1441_vm3, %vm1442_vm2  ;;  %vm1334_vm12 = vweird.f32 %v3307_v11 }
 0x296   : > { %v1437_v56 = vmul.f32 %v2457_v26, %v1436_v29  ;;  %v1424_v18 = vpop.xlane.xlu2 %1423  ;;  %v1348_v6 = vmul.f32 %v1317_v24, %v3255_v35 }
 0x297   : > { %v1321_v33 = vmul.f32 0.5, %v1320_v23  ;;  %v1429_v36 = vmul.f32 %v1424_v18, %v3298_v9 }
 0x298   : > { %v1438_v41 = vmul.f32 0.5, %v1437_v56  ;;  %v3319_v43 = vmul.f32 %v3313_v30, %v1348_v6 }
 0x299   : > { %v3321_v44 = vadd.f32 1e-06, %v1429_v36  ;;  %v1322_v46 = vsub.f32 1.5, %v1321_v33 }
 0x29a   : > { %v2459_v45 = vpop.eup %2458  ;;  %v1439_v48 = vsub.f32 1.5, %v1438_v41  ;;  %1367 = vrot.lane.b32.xlu2 %v3319_v43, %s2768_s2  ;;  %1359 = vrot.lane.b32.xlu0 %v3319_v43, %s2766_s20 }
 0x29b   : > { %v2461_v35 = vpop.eup %2460  ;;  %v1446_v49 = vmul.f32 %v2459_v45, %v3305_v28  ;;  %2462 = vrsqrt.f32 %v3321_v44  ;;  %v1323_v55 = vmul.f32 %v2455_v42, %v1322_v46  ;;  %vm1452_vm8 = vweird.f32 %v2459_v45 }
 0x29c   : > { %v1440_v52 = vmul.f32 %v2457_v26, %v1439_v48  ;;  %v1329_v53 = vmul.f32 %v2461_v35, %v3307_v11  ;;  %vm1335_vm9 = vweird.f32 %v2461_v35  ;;  %vm1453_vm11 = vmor %vm1451_vm10, %vm1452_vm8  ;;  %vm1461_vm15 = vweird.f32 %v3321_v44 }
 0x29d   : > { %v1447_v54 = vmul.f32 %v2459_v45, %v1446_v49  ;;  %v1327_v4 = vsel %vm1326_vm7, %v2455_v42, %v1323_v55  ;;  %vm1336_vm13 = vmor %vm1334_vm12, %vm1335_vm9  ;;  %vm2770_vm10 = vmmov 1   ;;  %v1276_v55 = vld [vmem:[%s3089_s22] sm:$0xff] }
 0x29e   : > { %v1330_v58 = vmul.f32 %v2461_v35, %v1329_v53  ;;  %v1426_v32 = vpop.xlane.xlu0 %1425  ;;  %v1444_v60 = vsel %vm1443_vm4, %v2457_v26, %v1440_v52  ;;  %v1349_v15 = vmul.f32 %v1327_v4, %v3262_v51 }
 0x29f   : > { %v1448_v63 = vmul.f32 0.5, %v1447_v54  ;;  %v1430_v2 = vmul.f32 %v1426_v32, %v3298_v9  ;;  %v1475_v39 = vmul.f32 %v1444_v60, %v3260_v50 }
 0x2a0   : > { %v1331_v40 = vmul.f32 0.5, %v1330_v58  ;;  %v3346_v20 = vmul.f32 %v3313_v30, %v1349_v15 }
 0x2a1   : > { %v2463_v3 = vpop.eup %2462  ;;  %v1434_v7 = vadd.f32 1e-06, %v1430_v2  ;;  %v1479_v8 = vmul.f32 %v3313_v30, %v1475_v39  ;;  %v1449_v10 = vsub.f32 1.5, %v1448_v63  ;;  %v1273_v2 = vld [vmem:[%s3082_s30 + $0x8] sm:$0xff] }
 0x2a2   : > { %v1332_v12 = vsub.f32 1.5, %v1331_v40  ;;  %v1456_v57 = vmul.f32 %v2463_v3, %v3321_v44  ;;  %vm1462_vm14 = vweird.f32 %v2463_v3  ;;  %v1277_v39 = vld [vmem:[%s3089_s22 + $0x8] sm:$0xff] }
 0x2a3   : > { %2464 = vrsqrt.f32 %v1434_v7  ;;  %1491 = vrot.lane.b32.xlu0 %v1479_v8, %s2768_s2  ;;  %1483 = vrot.lane.b32.xlu1 %v1479_v8, %s2766_s20  ;;  %v3340_v50 = vmul.f32 %v1479_v8, %v3335_v5  ;;  %v1450_v16 = vmul.f32 %v2459_v45, %v1449_v10  ;;  %vm1463_vm1 = vmor %vm1461_vm15, %vm1462_vm14  ;;  %vm1471_vm2 = vweird.f32 %v1434_v7 }
 0x2a4   : > { %v1457_v13 = vmul.f32 %v2463_v3, %v1456_v57  ;;  %v1333_v59 = vmul.f32 %v2461_v35, %v1332_v12  ;;  %v1387_v10 = vmul.f32 %v3319_v43, %v3335_v5  ;;  %v1388_v12 = vmul.f32 %v3346_v20, %v1273_v2  ;;  %v1274_v5 = vld [vmem:[%s3082_s30 + $0x10] sm:$0xff] }
 0x2a5   : > { %v1454_v34 = vsel %vm1453_vm11, %v2459_v45, %v1450_v16 }
 0x2a6   : > { %v1458_v17 = vmul.f32 0.5, %v1457_v13  ;;  %v1337_v51 = vsel %vm1336_vm13, %v2461_v35, %v1333_v59  ;;  %v1476_v27 = vmul.f32 %v1454_v34, %v3269_v47 }
 0x2a7   : > { %v1377_v19 = vpop.permute.xlu1 %1376  ;;  %v1350_v42 = vmul.f32 %v1337_v51, %v3271_v62  ;;  %v1275_v51 = vld [vmem:[%s3082_s30 + $0x18] sm:$0xff] }
 0x2a8   : > { %2265 = vpush %v1377_v19  ;;  %v1459_v21 = vsub.f32 1.5, %v1458_v17  ;;  %v3356_v37 = vmul.f32 %v3313_v30, %v1476_v27 }
 0x2a9   : > { %v2465_v25 = vpop.eup %2464  ;;  %v3359_v38 = vmul.f32 %v3313_v30, %v1350_v42 }
 0x2aa   : > { %v1466_v1 = vmul.f32 %v2465_v25, %v1434_v7  ;;  %v1460_v28 = vmul.f32 %v2463_v3, %v1459_v21  ;;  %vm1472_vm0 = vweird.f32 %v2465_v25 }
 0x2ab   : > { %1369 = vrot.lane.b32.xlu0 %v3346_v20, %s2768_s2  ;;  %1361 = vrot.lane.b32.xlu1 %v3346_v20, %s2766_s20  ;;  %vm1473_vm3 = vmor %vm1471_vm2, %vm1472_vm0  ;;  %v1279_v20 = vld [vmem:[%s3089_s22 + $0x18] sm:$0xff]  ;;  %v1389_v27 = vmul.f32 %v3359_v38, %v1274_v5 }
 0x2ac   : > { %v1467_v22 = vmul.f32 %v2465_v25, %v1466_v1  ;;  %v1464_v23 = vsel %vm1463_vm1, %v2463_v3, %v1460_v28 }
 0x2ad   : > { %v1477_v24 = vmul.f32 %v1464_v23, %v3277_v0 }
 0x2ae   : > { %v1468_v11 = vmul.f32 0.5, %v1467_v22 }
 0x2af   : > { %v3373_v18 = vmul.f32 %v3313_v30, %v1477_v24 }
 0x2b0   : > { %v1469_v26 = vsub.f32 1.5, %v1468_v11 }
 0x2b2   : > { %v1470_v29 = vmul.f32 %v2465_v25, %v1469_v26 }
 0x2b3   : > { %1485 = vrot.lane.b32.xlu0 %v3356_v37, %s2766_s20  ;;  %1371 = vrot.lane.b32.xlu1 %v3359_v38, %s2768_s2 }
 0x2b4   : > { %v1474_v47 = vsel %vm1473_vm3, %v2465_v25, %v1470_v29  ;;  %v1278_v25 = vld [vmem:[%s3089_s22 + $0x10] sm:$0xff] }
 0x2b5   : > { %v1478_v62 = vmul.f32 %v1474_v47, %v3281_v14 }
 0x2b7   : > { %v3368_v56 = vmul.f32 %v3313_v30, %v1478_v62 }
 0x2b9   : > { %1489 = vrot.lane.b32.xlu2 %v3368_v56, %s2766_s20 }
 0x2bb   : > { %1487 = vrot.lane.b32.xlu1 %v3373_v18, %s2766_s20  ;;  %1363 = vrot.lane.b32.xlu0 %v3359_v38, %s2766_s20 }
 0x2c1   : > { %1495 = vrot.lane.b32.xlu2 %v3373_v18, %s2768_s2 }
 0x2d2   : > { %v1292_v14 = vpop.xlane.xlu1 %1291 }
 0x2d3   : > { %v1303_v0 = vmul.f32 %v3298_v9, %v1292_v14  ;;  %v1270_v9 = vand.u32 1, %v3245_v31 }
 0x2d5   : > { %v1307_v6 = vadd.f32 1e-06, %v1303_v0  ;;  %vm1271_vm7 = vcmp.eq.s32.totalorder %v1270_v9, 0  ;;  %v1504_v0 = vmul.f32 %v3356_v37, %v1273_v2 }
 0x2d7   : > { %2466 = vrsqrt.f32 %v1307_v6  ;;  %vm1344_vm5 = vweird.f32 %v1307_v6 }
 0x2d9   : > { %s2266_s10 = spop %2265 }
 0x2da   : > { %v1379_v52 = vstv %s2266_s10 }
 0x2db   : > { %vm1380_vm8 = vcmp.eq.s32.totalorder %v1379_v52, 1 }
 0x2dc   : > { %vm1381_vm9 = vmxor %vm1271_vm7, %vm1380_vm8 }
 0x2dd   : > { %v2467_v33 = vpop.eup %2466  ;;  %vm3391_vm11 = vmxor %vm1381_vm9, %vm2770_vm10 }
 0x2de   : > { %v1339_v36 = vmul.f32 %v2467_v33, %v1307_v6  ;;  %vm1345_vm4 = vweird.f32 %v2467_v33 }
 0x2df   : > { %vm1346_vm6 = vmor %vm1344_vm5, %vm1345_vm4 }
 0x2e0   : > { %v1340_v41 = vmul.f32 %v2467_v33, %v1339_v36 }
 0x2e2   : > { %v1341_v44 = vmul.f32 0.5, %v1340_v41  ;;  %v1506_v41 = vmul.f32 %v3368_v56, %v1275_v51 }
 0x2e4   : > { %v1342_v45 = vsub.f32 1.5, %v1341_v44 }
 0x2e6   : > { %v1343_v46 = vmul.f32 %v2467_v33, %v1342_v45 }
 0x2e8   : > { %v1347_v48 = vsel %vm1346_vm6, %v2467_v33, %v1343_v46  ;;  %v1505_v33 = vmul.f32 %v3373_v18, %v1274_v5 }
 0x2e9   : > { %v1351_v35 = vmul.f32 %v1347_v48, %v3294_v61 }
 0x2eb   : > { %v1358_v49 = vmul.f32 %v3313_v30, %v1351_v35 }
 0x2ed   : > { %1365 = vrot.lane.b32.xlu1 %v1358_v49, %s2766_s20  ;;  %1373 = vrot.lane.b32.xlu0 %v1358_v49, %s2768_s2  ;;  %v1390_v42 = vmul.f32 %v1358_v49, %v1275_v51 }
 0x2f4   : > { %v1368_v31 = vpop.permute.xlu2 %1367 }
 0x2f5   : > { %1493 = vrot.lane.b32.xlu1 %v3356_v37, %s2768_s2  ;;  %1497 = vrot.lane.b32.xlu0 %v3368_v56, %s2768_s2 }
 0x30c   : > { %v1360_v61 = vpop.permute.xlu0 %1359 }
 0x30d   : > { %v1383_v63 = vsel %vm3391_vm11, %v1368_v31, %v1360_v61 }
 0x30e   : > { %v1391_v40 = vmul.f32 %v1383_v63, %v1276_v55 }
 0x310   : > { %v1395_v4 = vadd.f32 %v1391_v40, %v1387_v10 }
 0x313   : > { %v1490_v19 = vpop.permute.xlu2 %1489 }
 0x315   : > { %v1484_v53 = vpop.permute.xlu1 %1483  ;;  %v1492_v54 = vpop.permute.xlu0 %1491 }
 0x316   : > { %v1499_v58 = vsel %vm3391_vm11, %v1492_v54, %v1484_v53 }
 0x317   : > { %v1507_v32 = vmul.f32 %v1499_v58, %v1276_v55 }
 0x319   : > { %v1511_v60 = vadd.f32 %v1507_v32, %v3340_v50 }
 0x31b   : > { %v1496_v11 = vpop.permute.xlu2 %1495 }
 0x31d   : > { %v1362_v3 = vpop.permute.xlu1 %1361  ;;  %v1370_v7 = vpop.permute.xlu0 %1369 }
 0x31e   : > { %v1384_v8 = vsel %vm3391_vm11, %v1370_v7, %v1362_v3 }
 0x31f   : > { %v1392_v57 = vmul.f32 %v1384_v8, %v1277_v39 }
 0x321   : > { %v1396_v50 = vadd.f32 %v1392_v57, %v1388_v12 }
 0x323   : > { %v2222_v13 = vpack.c.bf16 %v1396_v50, %v1395_v4 }
 0x325   : > { %2223 = vst [vmem:[%s3409_s16] sm:$0xff] %v2222_v13   ;;  %v1372_v15 = vpop.permute.xlu1 %1371  ;;  %v1486_v16 = vpop.permute.xlu0 %1485 }
 0x32d   : > { %v1488_v59 = vpop.permute.xlu1 %1487  ;;  %v1364_v17 = vpop.permute.xlu0 %1363 }
 0x32e   : > { %v1385_v43 = vsel %vm3391_vm11, %v1372_v15, %v1364_v17  ;;  %v1501_v23 = vsel %vm3391_vm11, %v1496_v11, %v1488_v59 }
 0x32f   : > { %v1393_v21 = vmul.f32 %v1385_v43, %v1278_v25  ;;  %v1509_v62 = vmul.f32 %v1501_v23, %v1278_v25 }
 0x331   : > { %v1397_v26 = vadd.f32 %v1393_v21, %v1389_v27  ;;  %v1513_v45 = vadd.f32 %v1509_v62, %v1505_v33 }
 0x35f   : > { %v1366_v1 = vpop.permute.xlu1 %1365  ;;  %v1374_v34 = vpop.permute.xlu0 %1373 }
 0x360   : > { %v1386_v22 = vsel %vm3391_vm11, %v1374_v34, %v1366_v1 }
 0x361   : > { %v1394_v28 = vmul.f32 %v1386_v22, %v1279_v20 }
 0x363   : > { %v1398_v29 = vadd.f32 %v1394_v28, %v1390_v42 }
 0x365   : > { %v2227_v47 = vpack.c.bf16 %v1398_v29, %v1397_v26 }
 0x367   : > { %2259 = vst [vmem:[%s3409_s16 + $0x8] sm:$0xff] %v2227_v47   ;;  %v1494_v24 = vpop.permute.xlu1 %1493  ;;  %v1498_v14 = vpop.permute.xlu0 %1497 }
 0x368   : > { %v1500_v38 = vsel %vm3391_vm11, %v1494_v24, %v1486_v16  ;;  %v1502_v6 = vsel %vm3391_vm11, %v1498_v14, %v1490_v19 }
 0x369   : > { %v1508_v36 = vmul.f32 %v1500_v38, %v1277_v39  ;;  %v1510_v44 = vmul.f32 %v1502_v6, %v1279_v20 }
 0x36b   : > { %v1512_v46 = vadd.f32 %v1508_v36, %v1504_v0  ;;  %v1514_v48 = vadd.f32 %v1510_v44, %v1506_v41 }
 0x36d   : > { %v2242_v35 = vpack.c.bf16 %v1512_v46, %v1511_v60  ;;  %v2247_v49 = vpack.c.bf16 %v1514_v48, %v1513_v45 }
 0x36f   : > { %2261 = vst [vmem:[%s3409_s16 + $0x10] sm:$0xff] %v2242_v35  }
 0x370   : > { %2262 = vst [vmem:[%s3409_s16 + $0x18] sm:$0xff] %v2247_v49  }
 0x371   : > { %s3590_s4 = sld [smem:[#allocation30_spill]]  ;;  %s1563_s19 = sshll.u32 %s3409_s16, 4  ;;  %s1564_s19 = int_to_ptr.vmem [resolvable:$true] %s1563_s19 }
 0x372   : > { %s3591_s5 = sld [smem:[#allocation31_spill]]  ;;  %s2771_s30 = smov 256  }
 0x373   : > { %s3593_s25 = sld [smem:[#allocation49_spill]]  ;;  %s2772_s22 = smov 512  }
 0x374   : > { %2281 = sst [smem:[#allocation17]] (%p2955_p5), %s2771_s30  ;;  %s2773_s20 = smov 4  }
 0x375   : > { %2282 = sst [smem:[#allocation17 + $0x1]] (%p2955_p5), %s2772_s22  ;;  %s2774_s28 = smov 64  }
 0x376   : > { %2283 = sst [smem:[#allocation17 + $0x2]] (%p2955_p5), %s2773_s20  ;;  %s2775_s24 = smov [#allocation16]  }
 0x377   : > { %s2146_s6 = sshll.u32 %s3590_s4, 2  ;;  %2284 = sst [smem:[#allocation17 + $0x3]] (%p2955_p5), %s2774_s28 }
 0x378   : > { %s2147_s17 = sshll.u32 %s3591_s5, 4  ;;  %2285 = sst [smem:[#allocation17 + $0x4]] (%p2955_p5), %s2774_s28 }
 0x379   : > { %s1550_s18 = sadd.s32 %s2147_s17, %s2146_s6  ;;  %2286 = sst [smem:[#allocation17 + $0x5]] (%p2955_p5), %s2773_s20 }
 0x37a   : > { %s2148_s27 = sshll.u32 %s1550_s18, 2  ;;  %s2776_s7 = smov 0  }
 0x37b   : > { %s1552_s8 = scalar_lea.hbm %s3593_s25, %s2148_s27 }
 0x37c   : > { %s1565_s12 = sshll.u32 %s1552_s8, 4  ;;  %s1566_s12 = int_to_ptr.hbm [resolvable:$true] %s1565_s12 }
 0x37d   : > { %2287 = dma.general (%p2955_p5), %s1564_s19, 512, %s1566_s12, %s1534_s9, %s2775_s24, [#allocation17], %s2776_s7, 0  }
 0x37e   : > { %s3594_s29 = sld [smem:[#allocation50_spill]]  ;;  %s1605_s10 = sshll.u32 %s3286_s23, 4  ;;  %s1606_s10 = int_to_ptr.vmem [resolvable:$true] %s1605_s10 }
 0x37f   : > { %s2777_s4 = smov 256   ;;  %s2778_s9 = smov 512  }
 0x380   : > { %2288 = sst [smem:[#allocation19]] (%p2955_p5), %s2777_s4  ;;  %s2779_s5 = smov 4  }
 0x381   : > { %2289 = sst [smem:[#allocation19 + $0x1]] (%p2955_p5), %s2778_s9  ;;  %s2780_s6 = smov 64  }
 0x382   : > { %2290 = sst [smem:[#allocation19 + $0x2]] (%p2955_p5), %s2779_s5  ;;  %s2781_s23 = smov [#allocation18]  }
 0x383   : > { %2291 = sst [smem:[#allocation19 + $0x3]] (%p2955_p5), %s2780_s6  ;;  %s2782_s17 = smov 0  }
 0x384   : > { %s1594_s1 = scalar_lea.hbm %s3594_s29, %s2148_s27  ;;  %2292 = sst [smem:[#allocation19 + $0x4]] (%p2955_p5), %s2780_s6 }
 0x385   : > { %s1607_s16 = sshll.u32 %s1594_s1, 4  ;;  %2293 = sst [smem:[#allocation19 + $0x5]] (%p2955_p5), %s2779_s5  ;;  %s1608_s16 = int_to_ptr.hbm [resolvable:$true] %s1607_s16 }
 0x386   : > { %2294 = dma.general (%p2955_p5), %s1606_s10, 512, %s1608_s16, %s1539_s15, %s2781_s23, [#allocation19], %s2782_s17, 0  }
 0x387 PF: > { %s3595_s18 = sld [smem:[#allocation34_spill]] }
 0x388   : > { %s3596_s19 = sld [smem:[#allocation28_spill]] }
 0x38d   : > { %p2327_p6 = scmp.ge.s32.totalorder %s3595_s18, 2 }
 0x38e   : > { %s1635_s21 = sand.u32 1, %s3596_s19  }
 0x38f   : > { %p2318_p7 = pnand %p2327_p6, %p2962_p8  ;;  %s1636_s26 = scalar_lea.sflag [#allocation4], %s1635_s21 }
 0x391   : > { %p2319_p13 = pneg %p2318_p7 }
 0x393   : > { %2709 = dma.done.wait (%p2319_p13), %s1636_s26, 512  }
 0x394   : > { %2711 = vsyncadd (%p2319_p13), %s1636_s26, 4294966784  ;;  %s1646_s25 = scalar_lea.sflag [#allocation15], %s1635_s21 }
 0x395   : > { %2713 = dma.done.wait (%p2319_p13), %s1646_s25, 512  }
 0x396   : > { %2715 = vsyncadd (%p2319_p13), %s1646_s25, 4294966784  ;;  %s36_s19 = sadd.s32 1, %s3595_s18   ;;  %s3598_s30 = sld [smem:[#allocation26_spill]] }
 0x397   : > { %p33_p2 = scmp.ge.s32.totalorder %s36_s19, 6   ;;  %s3599_s10 = sld [smem:[#allocation27_spill]] }
 0x398   : > { %s3600_s11 = sld [smem:[#allocation37_spill]]  ;;  %s3607_s12 = smov %s2734_s13 }
 0x399   : > { %s3601_s3 = sld [smem:[#allocation29_spill]] }
 0x39a   : > { %s3602_s14 = sld [smem:[#allocation38_spill]] }
 0x39b   : > { %s3603_s15 = sld [smem:[#allocation32_spill]]  ;;  %35 = sbr.rel (!%p33_p2) target bundleno = 26 (0x1a), region = 178 }
 0x39c   : > { %s3604_s16 = sld [smem:[#allocation33_spill]] }
 0x39d   : > { %s3605_s17 = sld [smem:[#allocation35_spill]] }
 0x39e   : > { %s3606_s18 = sld [smem:[#allocation36_spill]] }
 0x39f   : > { %s3608_s13 = smov %s3601_s3 }
 0x3a0   :  { %1652 = vsyncpa [#allocation3], 1 }
 0x3a1   :  { %1654 = vsyncpa [#allocation3 + $0x1], 1 }
 0x3a2   :  { %1655 = vsyncpa [#allocation6], 1 }
 0x3a3   :  { %1657 = vsyncpa [#allocation6 + $0x1], 1 }
 0x3a4   :  { %1658 = vsyncpa [#allocation9], 1 }
 0x3a5   :  { %1660 = vsyncpa [#allocation9 + $0x1], 1 }
 0x3a6   :  { %1661 = vsyncpa [#allocation12], 1 }
 0x3a7   :  { %1662 = vsyncpa [#allocation4], 1 }
 0x3a8   :  { %1664 = vsyncpa [#allocation4 + $0x1], 1 }
 0x3a9   :  { %1665 = vsyncpa [#allocation15], 1 }
 0x3aa   :  { %1667 = vsyncpa [#allocation15 + $0x1], 1 }

</bundles_post_ra>
